<compile_context>
chip_gen: v7x
topology: tpu7x:2x2x1
jax: 0.10.0
libtpu: 0.0.40
codegen_flags: <defaults>
</compile_context>

<pallas_src>
import jax
import jax.numpy as jnp
from jax.experimental import pallas as pl
from jax.experimental.pallas import tpu as pltpu


_LANE = 1024            # lane-dense row width (8 full f32 vregs per row)
_TILE_ROWS_MAX = 1024   # 4 MiB f32 block -> 16 MiB double-buffered in+out
_TILE_ROWS_MIN = 256    # floor so per-step DMA still amortizes fixed overhead
_PALLAS_MIN_N = 64 * 1024  # below this, custom-call dispatch isn't worth it


def _linear_kernel(wb_ref, x_ref, o_ref):
    # wb_ref: (2,) f32 in SMEM -> [w, b].  x_ref/o_ref: (tile_rows, 1024) VMEM.
    # Pure VPU fma; explicit cast so a non-f32 output dtype would still match.
    w = wb_ref[0]
    b = wb_ref[1]
    o_ref[...] = (x_ref[...] * w + b).astype(o_ref.dtype)


def linear_reg_forward(x, weight, bias):
    """Forward pass of LinearReg (torch.nn.Linear(1, 1)).

    x:      (N, 1) float32
    weight: (1, 1) float32   (PyTorch Linear weight, out_features x in_features)
    bias:   (1,)   float32
    returns (N, 1) float32
    """
    n, in_f = x.shape
    assert in_f == 1 and weight.shape == (1, 1) and bias.shape == (1,)
    dtype = x.dtype

    # Tiny-batch fast path: plain XLA elementwise op.
    if n < _PALLAS_MIN_N:
        return (x * weight[0, 0] + bias[0]).astype(dtype)

    # Single (2,) SMEM operand carrying [w, b].
    wb = jnp.concatenate([weight.reshape(1), bias]).astype(dtype)

    # Lane-granular padding only (<= 1023 extra elements).  When N is already
    # a multiple of 1024 the slab is a free reshape view (no pad, no slice).
    rows = pl.cdiv(n, _LANE)
    n_pad = rows * _LANE
    padded = n_pad != n
    if padded:
        slab = jnp.pad(x.reshape(-1), (0, n_pad - n)).reshape(rows, _LANE)
    else:
        slab = x.reshape(rows, _LANE)

    # Largest tile that still leaves >= 4 grid steps (keeps both v7x
    # TensorCores busy); never below 256 rows so per-step overhead stays small.
    tile_rows = _TILE_ROWS_MAX
    while tile_rows > _TILE_ROWS_MIN and pl.cdiv(rows, tile_rows) < 4:
        tile_rows //= 2
    grid = (pl.cdiv(rows, tile_rows),)

    extra_kwargs = {}
    if padded:
        # Slab is a kernel-local temporary here -> safe to write back in place
        # (halves HBM footprint of temporaries; block i is read before written).
        extra_kwargs["input_output_aliases"] = {1: 0}

    out_slab = pl.pallas_call(
        _linear_kernel,
        out_shape=jax.ShapeDtypeStruct((rows, _LANE), dtype),
        grid_spec=pl.GridSpec(
            grid=grid,
            in_specs=[
                pl.BlockSpec(memory_space=pltpu.MemorySpace.SMEM),      # [w, b]
                pl.BlockSpec((tile_rows, _LANE), lambda i: (i, 0)),     # x slab
            ],
            out_specs=pl.BlockSpec((tile_rows, _LANE), lambda i: (i, 0)),
        ),
        compiler_params=pltpu.CompilerParams(
            # Independent row tiles: v7x shards the grid across its two TCs;
            # harmless no-op on single-TC v5e/v6e.
            dimension_semantics=("parallel",),
            # 16 MiB of double-buffered 4 MiB tiles + headroom; also lifts
            # v5e's 16 MiB default scoped-VMEM limit (128 MiB physical).
            vmem_limit_bytes=32 << 20,
        ),
        cost_estimate=pl.CostEstimate(
            flops=2 * n_pad, transcendentals=0, bytes_accessed=8 * n_pad),
        **extra_kwargs,
    )(wb, slab)

    if padded:
        # Strip the (< 1024-element) pad and restore (N, 1).
        # TODO(synk): unaligned N still pays one pad copy + one slice copy;
        # fully eliminating them needs allow_input_fusion or an aligned caller.
        return out_slab.reshape(-1)[:n].reshape(n, 1)
    return out_slab.reshape(n, 1)


if __name__ == "__main__":
    key = jax.random.PRNGKey(0)
    kx, kw, kb = jax.random.split(key, 3)

    # Deterministic parameter init (mimics nn.Linear(1,1): U(-1, 1) for fan_in=1)
    weight = jax.random.uniform(kw, (1, 1), jnp.float32, minval=-1.0, maxval=1.0)
    bias = jax.random.uniform(kb, (1,), jnp.float32, minval=-1.0, maxval=1.0)

    # 1) Small batch consistent with Linear(1, 1): exercises the jnp fallback.
    x_small = jax.random.normal(kx, (8, 1), jnp.float32)
    y_small = linear_reg_forward(x_small, weight, bias)
    jax.block_until_ready(y_small)
    ref_small = x_small @ weight.T + bias
    assert y_small.shape == (8, 1)
    assert jnp.allclose(y_small, ref_small, atol=1e-6), "small-batch mismatch"

    # 2) Lane-aligned batch: zero-copy Pallas path (pure reshapes, no pad/slice).
    n_al = 262_144
    x_al = jax.random.normal(kx, (n_al, 1), jnp.float32)
    y_al = linear_reg_forward(x_al, weight, bias)
    jax.block_until_ready(y_al)
    assert y_al.shape == (n_al, 1)
    assert jnp.allclose(y_al, x_al @ weight.T + bias, atol=1e-5), "aligned mismatch"

    # 3) Unaligned batch: lane-granular pad + cdiv grid with a partial last
    #    row-block (masked by Pallas) + aliased in-place slab writeback.
    n_un = 300_000
    x_un = jax.random.normal(kx, (n_un, 1), jnp.float32)
    y_un = linear_reg_forward(x_un, weight, bias)
    jax.block_until_ready(y_un)
    assert y_un.shape == (n_un, 1)
    assert jnp.allclose(y_un, x_un @ weight.T + bias, atol=1e-5), "unaligned mismatch"

    print("KERNEL_OK")
</pallas_src>

<mosaic_0001>
module attributes {stable_mosaic.version = 11 : i64} {
  func.func @_linear_kernel(%arg0: i32, %arg1: memref<2xf32, #tpu.memory_space<smem>>, %arg2: memref<256x1024xf32, #tpu.memory_space<vmem>>, %arg3: memref<256x1024xf32, #tpu.memory_space<vmem>>) attributes {dimension_semantics = [#tpu.dimension_semantics<parallel>], iteration_bounds = array<i64: 1>, scalar_prefetch = 0 : i64, scratch_operands = 0 : i64, tpu.core_type = #tpu.core_type<tc>, window_params = [{transform_indices = @transform_0, window_bounds = array<i64: 2>}, {transform_indices = @transform_1, window_bounds = array<i64: 256, 1024>}, {transform_indices = @transform_2, window_bounds = array<i64: 256, 1024>}]} {
    %c0 = arith.constant 0 : index
    %0 = memref.load %arg1[%c0] : memref<2xf32, #tpu.memory_space<smem>>
    %c1 = arith.constant 1 : index
    %1 = memref.load %arg1[%c1] : memref<2xf32, #tpu.memory_space<smem>>
    %c0_0 = arith.constant 0 : index
    %c0_1 = arith.constant 0 : index
    %2 = vector.load %arg2[%c0_0, %c0_1] : memref<256x1024xf32, #tpu.memory_space<vmem>>, vector<256x1024xf32>
    %3 = vector.broadcast %0 : f32 to vector<256x1024xf32>
    %4 = arith.mulf %2, %3 : vector<256x1024xf32>
    %5 = vector.broadcast %1 : f32 to vector<256x1024xf32>
    %6 = arith.addf %4, %5 : vector<256x1024xf32>
    %c0_2 = arith.constant 0 : index
    %c0_3 = arith.constant 0 : index
    %7 = vector.load %arg3[%c0_2, %c0_3] : memref<256x1024xf32, #tpu.memory_space<vmem>>, vector<256x1024xf32>
    tpu.vector_store %arg3[%c0_2, %c0_3], %6 {strides = array<i32>} : memref<256x1024xf32, #tpu.memory_space<vmem>>, vector<256x1024xf32>,
    return
  }
  func.func @transform_0(%arg0: i32) -> i32 {
    %c0_i32 = arith.constant 0 : i32
    %c0_i32_0 = arith.constant 0 : i32
    return %c0_i32 : i32
  }
  func.func @transform_1(%arg0: i32) -> (i32, i32) {
    %c0_i32 = arith.constant 0 : i32
    %c0_i32_0 = arith.constant 0 : i32
    return %arg0, %c0_i32 : i32, i32
  }
  func.func @transform_2(%arg0: i32) -> (i32, i32) {
    %c0_i32 = arith.constant 0 : i32
    %c0_i32_0 = arith.constant 0 : i32
    return %arg0, %c0_i32 : i32, i32
  }
}

</mosaic_0001>

<bundles_post_ra>
// kernel: tpu_custom_call.1
= control target key start
LH: loop header
LB: loop body
LE: loop exit
PB: predicated region body
PF: predicated region fallthrough
CT: control target
= control target key end

     0   :  { %7 = vsyncpa [#allocation5], 0  ;;  %s1727_s0 = inlined_call_operand.hbm [shape: f32[2], index: 0, kind: input, shape index: {}]   ;;  %s1728_s1 = inlined_call_operand.hbm [shape: f32[256,1024], index: 1, kind: input, shape index: {}]   ;;  %s1729_s2 = inlined_call_operand.hbm [shape: f32[256,1024], index: 2, kind: output, shape index: {}]  }
   0x1   :  { %8 = vsyncpa [#allocation3], 0 }
   0x2   :  { %9 = vsyncpa [#allocation4], 0  ;;  %s1089_s11 = scalar_lea.hbm %s1727_s0, 16 }
   0x3   :  { %p1090_p0 = scmp.ne.s32.totalorder %s1727_s0, %s1089_s11  ;;  %p1093_p1 = scmp.lt.u32.totalorder %s1089_s11, %s1727_s0 }
   0x5   :  { %p1095_p2 = pnand %p1093_p1, %p1090_p0 }
   0x7   :  { %1098 = shalt.err (!%p1095_p2)
}
   0x8   :  { %s1149_s16 = smov [#allocation2]   ;;  %s1150_s19 = smov [#allocation6]  }
   0x9   :  { %17 = dma.hbm_to_smem %s1727_s0, 16, %s1149_s16, [#allocation5]  }
   0xa   :  { %s23_s20 = sshll.u32 %s1150_s19, 4  ;;  %s1099_s23 = scalar_lea.hbm %s1728_s1, 32768  ;;  %s24_s20 = int_to_ptr.vmem [resolvable:$true] %s23_s20 }
   0xb   :  { %p1100_p3 = scmp.ne.s32.totalorder %s1728_s1, %s1099_s23  ;;  %p1103_p4 = scmp.lt.u32.totalorder %s1099_s23, %s1728_s1 }
   0xd   :  { %p1105_p5 = pnand %p1103_p4, %p1100_p3 }
   0xf   :  { %1108 = shalt.err (!%p1105_p5)
}
  0x10   :  { %s1109_s28 = scalar_lea.vmem %s24_s20, 32768  ;;  %p1114_p7 = scmp.lt.s32.totalorder %s24_s20, %s24_s20 }
  0x11   :  { %p1110_p6 = scmp.ne.s32.totalorder %s24_s20, %s1109_s28  ;;  %p1115_p8 = scmp.lt.s32.totalorder %s1109_s28, %s1109_s28 }
  0x13   :  { %p1116_p9 = por %p1115_p8, %p1114_p7 }
  0x15   :  { %p1117_p10 = pnand %p1116_p9, %p1110_p6 }
  0x17   :  { %1120 = shalt.err (!%p1117_p10)
}
  0x18   :  { %s1151_s0 = smov 1024   ;;  %s1152_s29 = smov 64  }
  0x19   :  { %29 = dma.hbm_to_vmem [thread:$0]  %s1728_s1, 32768, %s24_s20, [#allocation3], %s1151_s0, %s1151_s0, %s1152_s29  }
  0x1a   :  { %1143 = dma.done.wait [#allocation5], 16  }
  0x1b   :  { %1144 = vsyncadd [#allocation5], 4294967280 }
  0x1c   :  { %1145 = dma.done.wait [#allocation3], 32768  }
  0x1d   :  { %1146 = vsyncadd [#allocation3], 4294934528 }
  0x1e   :  { %36 = sfence }
  0x1f   :  { %s37_s4 = sld [smem:[#allocation2]]  ;;  %s1083_s5 = sld [smem:[#allocation2 + $0x1]]  ;;  %v39_v0 = vld [vmem:[#allocation6] sm:$0xff]  ;;  %v40_v1 = vld [vmem:[#allocation6 + $0x8] sm:$0xff]  ;;  %v41_v2 = vld [vmem:[#allocation6 + $0x10] sm:$0xff] }
  0x20   :  { %v42_v3 = vld [vmem:[#allocation6 + $0x18] sm:$0xff]  ;;  %v43_v4 = vld [vmem:[#allocation6 + $0x20] sm:$0xff]  ;;  %v44_v5 = vld [vmem:[#allocation6 + $0x28] sm:$0xff]  ;;  %s1153_s1 = smov [#allocation7]  }
  0x21   :  { %v45_v6 = vld [vmem:[#allocation6 + $0x30] sm:$0xff]  ;;  %v46_v7 = vld [vmem:[#allocation6 + $0x38] sm:$0xff]  ;;  %v47_v14 = vld [vmem:[#allocation6 + $0x40] sm:$0xff]  ;;  %s1070_s6 = sshll.u32 %s1153_s1, 4  ;;  %s1071_s6 = int_to_ptr.vmem [resolvable:$true] %s1070_s6 }
  0x22   :  { %v48_v15 = vld [vmem:[#allocation6 + $0x48] sm:$0xff]  ;;  %v49_v20 = vld [vmem:[#allocation6 + $0x50] sm:$0xff]  ;;  %v50_v21 = vld [vmem:[#allocation6 + $0x58] sm:$0xff]  ;;  %s1121_s7 = scalar_lea.vmem %s1071_s6, 32768  ;;  %p1126_p12 = scmp.lt.s32.totalorder %s1071_s6, %s1071_s6 }
  0x23   :  { %v51_v22 = vld [vmem:[#allocation6 + $0x60] sm:$0xff]  ;;  %v52_v27 = vld [vmem:[#allocation6 + $0x68] sm:$0xff]  ;;  %v53_v28 = vld [vmem:[#allocation6 + $0x70] sm:$0xff]  ;;  %p1122_p11 = scmp.ne.s32.totalorder %s1071_s6, %s1121_s7  ;;  %p1127_p13 = scmp.lt.s32.totalorder %s1121_s7, %s1121_s7 }
  0x24   :  { %v54_v29 = vld [vmem:[#allocation6 + $0x78] sm:$0xff]  ;;  %v55_v38 = vld [vmem:[#allocation6 + $0x80] sm:$0xff]  ;;  %v56_v39 = vld [vmem:[#allocation6 + $0x88] sm:$0xff] }
  0x25   :  { %v1196_v8 = vstv %s37_s4  ;;  %v1198_v9 = vstv %s1083_s5  ;;  %v57_v44 = vld [vmem:[#allocation6 + $0x90] sm:$0xff]  ;;  %v58_v45 = vld [vmem:[#allocation6 + $0x98] sm:$0xff]  ;;  %v59_v46 = vld [vmem:[#allocation6 + $0xa0] sm:$0xff]  ;;  %p1128_p0 = por %p1127_p13, %p1126_p12 }
  0x26   :  { %v296_v10 = vmul.f32 %v1196_v8, %v39_v0  ;;  %v297_v11 = vmul.f32 %v1196_v8, %v40_v1  ;;  %v298_v12 = vmul.f32 %v1196_v8, %v41_v2  ;;  %v299_v13 = vmul.f32 %v1196_v8, %v42_v3  ;;  %v60_v51 = vld [vmem:[#allocation6 + $0xa8] sm:$0xff]  ;;  %v61_v52 = vld [vmem:[#allocation6 + $0xb0] sm:$0xff]  ;;  %v62_v53 = vld [vmem:[#allocation6 + $0xb8] sm:$0xff] }
  0x27   :  { %v300_v16 = vmul.f32 %v1196_v8, %v43_v4  ;;  %v301_v17 = vmul.f32 %v1196_v8, %v44_v5  ;;  %v302_v18 = vmul.f32 %v1196_v8, %v45_v6  ;;  %v303_v19 = vmul.f32 %v1196_v8, %v46_v7  ;;  %v63_v62 = vld [vmem:[#allocation6 + $0xc0] sm:$0xff]  ;;  %v64_v63 = vld [vmem:[#allocation6 + $0xc8] sm:$0xff]  ;;  %v65_v4 = vld [vmem:[#allocation6 + $0xd0] sm:$0xff]  ;;  %p1129_p1 = pnand %p1128_p0, %p1122_p11 }
  0x28   :  { %v553_v23 = vadd.f32 %v1198_v9, %v296_v10  ;;  %v554_v24 = vadd.f32 %v1198_v9, %v297_v11  ;;  %v555_v25 = vadd.f32 %v1198_v9, %v298_v12  ;;  %v556_v26 = vadd.f32 %v1198_v9, %v299_v13  ;;  %v66_v5 = vld [vmem:[#allocation6 + $0xd8] sm:$0xff]  ;;  %v67_v6 = vld [vmem:[#allocation6 + $0xe0] sm:$0xff]  ;;  %v68_v13 = vld [vmem:[#allocation6 + $0xe8] sm:$0xff] }
  0x29   :  { %v557_v30 = vadd.f32 %v1198_v9, %v300_v16  ;;  %v558_v31 = vadd.f32 %v1198_v9, %v301_v17  ;;  %v559_v32 = vadd.f32 %v1198_v9, %v302_v18  ;;  %v560_v33 = vadd.f32 %v1198_v9, %v303_v19 }
  0x2a   :  { %809 = vst [vmem:[#allocation7] sm:$0xff] %v553_v23  ;;  %810 = vst [vmem:[#allocation7 + $0x8] sm:$0xff] %v554_v24  ;;  %v304_v34 = vmul.f32 %v1196_v8, %v47_v14  ;;  %v305_v35 = vmul.f32 %v1196_v8, %v48_v15  ;;  %v306_v36 = vmul.f32 %v1196_v8, %v49_v20  ;;  %v69_v14 = vld [vmem:[#allocation6 + $0xf0] sm:$0xff]  ;;  %v70_v15 = vld [vmem:[#allocation6 + $0xf8] sm:$0xff] }
  0x2b   :  { %811 = vst [vmem:[#allocation7 + $0x10] sm:$0xff] %v555_v25  ;;  %812 = vst [vmem:[#allocation7 + $0x18] sm:$0xff] %v556_v26  ;;  %v307_v37 = vmul.f32 %v1196_v8, %v50_v21  ;;  %v308_v40 = vmul.f32 %v1196_v8, %v51_v22  ;;  %v309_v41 = vmul.f32 %v1196_v8, %v52_v27  ;;  %v71_v24 = vld [vmem:[#allocation6 + $0x100] sm:$0xff]  ;;  %v72_v25 = vld [vmem:[#allocation6 + $0x108] sm:$0xff] }
  0x2c   :  { %813 = vst [vmem:[#allocation7 + $0x20] sm:$0xff] %v557_v30  ;;  %814 = vst [vmem:[#allocation7 + $0x28] sm:$0xff] %v558_v31  ;;  %v310_v42 = vmul.f32 %v1196_v8, %v53_v28  ;;  %v311_v43 = vmul.f32 %v1196_v8, %v54_v29  ;;  %v561_v47 = vadd.f32 %v1198_v9, %v304_v34  ;;  %v73_v30 = vld [vmem:[#allocation6 + $0x110] sm:$0xff]  ;;  %v74_v31 = vld [vmem:[#allocation6 + $0x118] sm:$0xff] }
  0x2d   :  { %815 = vst [vmem:[#allocation7 + $0x30] sm:$0xff] %v559_v32  ;;  %816 = vst [vmem:[#allocation7 + $0x38] sm:$0xff] %v560_v33  ;;  %v562_v48 = vadd.f32 %v1198_v9, %v305_v35  ;;  %v563_v49 = vadd.f32 %v1198_v9, %v306_v36  ;;  %v564_v50 = vadd.f32 %v1198_v9, %v307_v37  ;;  %v75_v32 = vld [vmem:[#allocation6 + $0x120] sm:$0xff]  ;;  %v76_v37 = vld [vmem:[#allocation6 + $0x128] sm:$0xff] }
  0x2e   :  { %v565_v54 = vadd.f32 %v1198_v9, %v308_v40  ;;  %v566_v55 = vadd.f32 %v1198_v9, %v309_v41  ;;  %v567_v56 = vadd.f32 %v1198_v9, %v310_v42  ;;  %v568_v57 = vadd.f32 %v1198_v9, %v311_v43  ;;  %817 = vst [vmem:[#allocation7 + $0x40] sm:$0xff] %v561_v47 }
  0x2f   :  { %818 = vst [vmem:[#allocation7 + $0x48] sm:$0xff] %v562_v48  ;;  %819 = vst [vmem:[#allocation7 + $0x50] sm:$0xff] %v563_v49  ;;  %v312_v58 = vmul.f32 %v1196_v8, %v55_v38  ;;  %v313_v59 = vmul.f32 %v1196_v8, %v56_v39  ;;  %v314_v60 = vmul.f32 %v1196_v8, %v57_v44  ;;  %v77_v38 = vld [vmem:[#allocation6 + $0x130] sm:$0xff]  ;;  %v78_v39 = vld [vmem:[#allocation6 + $0x138] sm:$0xff] }
  0x30   :  { %820 = vst [vmem:[#allocation7 + $0x58] sm:$0xff] %v564_v50  ;;  %v315_v61 = vmul.f32 %v1196_v8, %v58_v45  ;;  %821 = vst [vmem:[#allocation7 + $0x60] sm:$0xff] %v565_v54  ;;  %v316_v0 = vmul.f32 %v1196_v8, %v59_v46  ;;  %v317_v1 = vmul.f32 %v1196_v8, %v60_v51  ;;  %v79_v48 = vld [vmem:[#allocation6 + $0x140] sm:$0xff]  ;;  %v80_v49 = vld [vmem:[#allocation6 + $0x148] sm:$0xff] }
  0x31   :  { %822 = vst [vmem:[#allocation7 + $0x68] sm:$0xff] %v566_v55  ;;  %823 = vst [vmem:[#allocation7 + $0x70] sm:$0xff] %v567_v56  ;;  %v318_v2 = vmul.f32 %v1196_v8, %v61_v52  ;;  %v319_v3 = vmul.f32 %v1196_v8, %v62_v53  ;;  %v569_v7 = vadd.f32 %v1198_v9, %v312_v58  ;;  %v81_v54 = vld [vmem:[#allocation6 + $0x150] sm:$0xff]  ;;  %v82_v55 = vld [vmem:[#allocation6 + $0x158] sm:$0xff] }
  0x32   :  { %824 = vst [vmem:[#allocation7 + $0x78] sm:$0xff] %v568_v57  ;;  %v570_v10 = vadd.f32 %v1198_v9, %v313_v59  ;;  %v571_v11 = vadd.f32 %v1198_v9, %v314_v60  ;;  %v572_v12 = vadd.f32 %v1198_v9, %v315_v61  ;;  %v573_v16 = vadd.f32 %v1198_v9, %v316_v0  ;;  %v83_v56 = vld [vmem:[#allocation6 + $0x160] sm:$0xff]  ;;  %v84_v61 = vld [vmem:[#allocation6 + $0x168] sm:$0xff] }
  0x33   :  { %v574_v17 = vadd.f32 %v1198_v9, %v317_v1  ;;  %v575_v18 = vadd.f32 %v1198_v9, %v318_v2  ;;  %v576_v19 = vadd.f32 %v1198_v9, %v319_v3  ;;  %825 = vst [vmem:[#allocation7 + $0x80] sm:$0xff] %v569_v7  ;;  %v320_v20 = vmul.f32 %v1196_v8, %v63_v62  ;;  %v85_v62 = vld [vmem:[#allocation6 + $0x170] sm:$0xff] }
  0x34   :  { %826 = vst [vmem:[#allocation7 + $0x88] sm:$0xff] %v570_v10  ;;  %827 = vst [vmem:[#allocation7 + $0x90] sm:$0xff] %v571_v11  ;;  %v321_v21 = vmul.f32 %v1196_v8, %v64_v63  ;;  %v322_v22 = vmul.f32 %v1196_v8, %v65_v4  ;;  %v323_v23 = vmul.f32 %v1196_v8, %v66_v5  ;;  %v86_v63 = vld [vmem:[#allocation6 + $0x178] sm:$0xff]  ;;  %v87_v10 = vld [vmem:[#allocation6 + $0x180] sm:$0xff] }
  0x35   :  { %828 = vst [vmem:[#allocation7 + $0x98] sm:$0xff] %v572_v12  ;;  %829 = vst [vmem:[#allocation7 + $0xa0] sm:$0xff] %v573_v16  ;;  %v324_v26 = vmul.f32 %v1196_v8, %v67_v6  ;;  %v325_v27 = vmul.f32 %v1196_v8, %v68_v13  ;;  %v326_v28 = vmul.f32 %v1196_v8, %v69_v14  ;;  %v88_v11 = vld [vmem:[#allocation6 + $0x188] sm:$0xff]  ;;  %v89_v16 = vld [vmem:[#allocation6 + $0x190] sm:$0xff] }
  0x36   :  { %830 = vst [vmem:[#allocation7 + $0xa8] sm:$0xff] %v574_v17  ;;  %831 = vst [vmem:[#allocation7 + $0xb0] sm:$0xff] %v575_v18  ;;  %v327_v29 = vmul.f32 %v1196_v8, %v70_v15  ;;  %v577_v33 = vadd.f32 %v1198_v9, %v320_v20  ;;  %v578_v34 = vadd.f32 %v1198_v9, %v321_v21  ;;  %v90_v17 = vld [vmem:[#allocation6 + $0x198] sm:$0xff]  ;;  %v91_v18 = vld [vmem:[#allocation6 + $0x1a0] sm:$0xff] }
  0x37   :  { %832 = vst [vmem:[#allocation7 + $0xb8] sm:$0xff] %v576_v19  ;;  %v579_v35 = vadd.f32 %v1198_v9, %v322_v22  ;;  %v580_v36 = vadd.f32 %v1198_v9, %v323_v23  ;;  %v581_v40 = vadd.f32 %v1198_v9, %v324_v26  ;;  %v582_v41 = vadd.f32 %v1198_v9, %v325_v27  ;;  %v92_v23 = vld [vmem:[#allocation6 + $0x1a8] sm:$0xff] }
  0x38   :  { %v583_v42 = vadd.f32 %v1198_v9, %v326_v28  ;;  %v584_v43 = vadd.f32 %v1198_v9, %v327_v29  ;;  %833 = vst [vmem:[#allocation7 + $0xc0] sm:$0xff] %v577_v33  ;;  %834 = vst [vmem:[#allocation7 + $0xc8] sm:$0xff] %v578_v34  ;;  %v328_v44 = vmul.f32 %v1196_v8, %v71_v24  ;;  %v93_v24 = vld [vmem:[#allocation6 + $0x1b0] sm:$0xff]  ;;  %v95_v34 = vld [vmem:[#allocation6 + $0x1c0] sm:$0xff] }
  0x39   :  { %835 = vst [vmem:[#allocation7 + $0xd0] sm:$0xff] %v579_v35  ;;  %836 = vst [vmem:[#allocation7 + $0xd8] sm:$0xff] %v580_v36  ;;  %v329_v45 = vmul.f32 %v1196_v8, %v72_v25  ;;  %v330_v46 = vmul.f32 %v1196_v8, %v73_v30  ;;  %v331_v47 = vmul.f32 %v1196_v8, %v74_v31  ;;  %v94_v25 = vld [vmem:[#allocation6 + $0x1b8] sm:$0xff]  ;;  %v96_v35 = vld [vmem:[#allocation6 + $0x1c8] sm:$0xff] }
  0x3a   :  { %837 = vst [vmem:[#allocation7 + $0xe0] sm:$0xff] %v581_v40  ;;  %838 = vst [vmem:[#allocation7 + $0xe8] sm:$0xff] %v582_v41  ;;  %v332_v50 = vmul.f32 %v1196_v8, %v75_v32  ;;  %v333_v51 = vmul.f32 %v1196_v8, %v76_v37  ;;  %v334_v52 = vmul.f32 %v1196_v8, %v77_v38  ;;  %v97_v40 = vld [vmem:[#allocation6 + $0x1d0] sm:$0xff]  ;;  %v98_v41 = vld [vmem:[#allocation6 + $0x1d8] sm:$0xff] }
  0x3b   :  { %839 = vst [vmem:[#allocation7 + $0xf0] sm:$0xff] %v583_v42  ;;  %840 = vst [vmem:[#allocation7 + $0xf8] sm:$0xff] %v584_v43  ;;  %v335_v53 = vmul.f32 %v1196_v8, %v78_v39  ;;  %v585_v57 = vadd.f32 %v1198_v9, %v328_v44  ;;  %v586_v58 = vadd.f32 %v1198_v9, %v329_v45  ;;  %v99_v42 = vld [vmem:[#allocation6 + $0x1e0] sm:$0xff] }
  0x3c   :  { %v587_v59 = vadd.f32 %v1198_v9, %v330_v46  ;;  %v588_v60 = vadd.f32 %v1198_v9, %v331_v47  ;;  %v589_v0 = vadd.f32 %v1198_v9, %v332_v50  ;;  %v590_v1 = vadd.f32 %v1198_v9, %v333_v51  ;;  %v100_v47 = vld [vmem:[#allocation6 + $0x1e8] sm:$0xff] }
  0x3d   :  { %v591_v2 = vadd.f32 %v1198_v9, %v334_v52  ;;  %v592_v3 = vadd.f32 %v1198_v9, %v335_v53  ;;  %841 = vst [vmem:[#allocation7 + $0x100] sm:$0xff] %v585_v57  ;;  %842 = vst [vmem:[#allocation7 + $0x108] sm:$0xff] %v586_v58  ;;  %v336_v4 = vmul.f32 %v1196_v8, %v79_v48  ;;  %v101_v48 = vld [vmem:[#allocation6 + $0x1f0] sm:$0xff]  ;;  %v103_v58 = vld [vmem:[#allocation6 + $0x200] sm:$0xff] }
  0x3e   :  { %843 = vst [vmem:[#allocation7 + $0x110] sm:$0xff] %v587_v59  ;;  %844 = vst [vmem:[#allocation7 + $0x118] sm:$0xff] %v588_v60  ;;  %v337_v5 = vmul.f32 %v1196_v8, %v80_v49  ;;  %v338_v6 = vmul.f32 %v1196_v8, %v81_v54  ;;  %v339_v7 = vmul.f32 %v1196_v8, %v82_v55  ;;  %v102_v49 = vld [vmem:[#allocation6 + $0x1f8] sm:$0xff]  ;;  %v104_v59 = vld [vmem:[#allocation6 + $0x208] sm:$0xff] }
  0x3f   :  { %845 = vst [vmem:[#allocation7 + $0x120] sm:$0xff] %v589_v0  ;;  %846 = vst [vmem:[#allocation7 + $0x128] sm:$0xff] %v590_v1  ;;  %v340_v12 = vmul.f32 %v1196_v8, %v83_v56  ;;  %v341_v13 = vmul.f32 %v1196_v8, %v84_v61  ;;  %v342_v14 = vmul.f32 %v1196_v8, %v85_v62  ;;  %v105_v0 = vld [vmem:[#allocation6 + $0x210] sm:$0xff]  ;;  %v106_v1 = vld [vmem:[#allocation6 + $0x218] sm:$0xff] }
  0x40   :  { %847 = vst [vmem:[#allocation7 + $0x130] sm:$0xff] %v591_v2  ;;  %848 = vst [vmem:[#allocation7 + $0x138] sm:$0xff] %v592_v3  ;;  %v343_v15 = vmul.f32 %v1196_v8, %v86_v63  ;;  %v593_v19 = vadd.f32 %v1198_v9, %v336_v4  ;;  %v594_v20 = vadd.f32 %v1198_v9, %v337_v5  ;;  %v107_v2 = vld [vmem:[#allocation6 + $0x220] sm:$0xff] }
  0x41   :  { %v595_v21 = vadd.f32 %v1198_v9, %v338_v6  ;;  %v596_v22 = vadd.f32 %v1198_v9, %v339_v7  ;;  %v597_v26 = vadd.f32 %v1198_v9, %v340_v12  ;;  %v598_v27 = vadd.f32 %v1198_v9, %v341_v13  ;;  %v108_v7 = vld [vmem:[#allocation6 + $0x228] sm:$0xff] }
  0x42   :  { %v599_v28 = vadd.f32 %v1198_v9, %v342_v14  ;;  %v600_v29 = vadd.f32 %v1198_v9, %v343_v15  ;;  %849 = vst [vmem:[#allocation7 + $0x140] sm:$0xff] %v593_v19  ;;  %850 = vst [vmem:[#allocation7 + $0x148] sm:$0xff] %v594_v20  ;;  %v344_v30 = vmul.f32 %v1196_v8, %v87_v10  ;;  %v109_v10 = vld [vmem:[#allocation6 + $0x230] sm:$0xff]  ;;  %v111_v20 = vld [vmem:[#allocation6 + $0x240] sm:$0xff] }
  0x43   :  { %851 = vst [vmem:[#allocation7 + $0x150] sm:$0xff] %v595_v21  ;;  %852 = vst [vmem:[#allocation7 + $0x158] sm:$0xff] %v596_v22  ;;  %v345_v31 = vmul.f32 %v1196_v8, %v88_v11  ;;  %v346_v32 = vmul.f32 %v1196_v8, %v89_v16  ;;  %v347_v33 = vmul.f32 %v1196_v8, %v90_v17  ;;  %v110_v11 = vld [vmem:[#allocation6 + $0x238] sm:$0xff]  ;;  %v112_v21 = vld [vmem:[#allocation6 + $0x248] sm:$0xff] }
  0x44   :  { %853 = vst [vmem:[#allocation7 + $0x160] sm:$0xff] %v597_v26  ;;  %854 = vst [vmem:[#allocation7 + $0x168] sm:$0xff] %v598_v27  ;;  %v348_v36 = vmul.f32 %v1196_v8, %v91_v18  ;;  %v349_v37 = vmul.f32 %v1196_v8, %v92_v23  ;;  %v350_v38 = vmul.f32 %v1196_v8, %v93_v24  ;;  %v113_v26 = vld [vmem:[#allocation6 + $0x250] sm:$0xff]  ;;  %v114_v27 = vld [vmem:[#allocation6 + $0x258] sm:$0xff] }
  0x45   :  { %855 = vst [vmem:[#allocation7 + $0x170] sm:$0xff] %v599_v28  ;;  %856 = vst [vmem:[#allocation7 + $0x178] sm:$0xff] %v600_v29  ;;  %v351_v39 = vmul.f32 %v1196_v8, %v94_v25  ;;  %v601_v43 = vadd.f32 %v1198_v9, %v344_v30  ;;  %v602_v44 = vadd.f32 %v1198_v9, %v345_v31  ;;  %v115_v28 = vld [vmem:[#allocation6 + $0x260] sm:$0xff] }
  0x46   :  { %v603_v45 = vadd.f32 %v1198_v9, %v346_v32  ;;  %v604_v46 = vadd.f32 %v1198_v9, %v347_v33  ;;  %v605_v50 = vadd.f32 %v1198_v9, %v348_v36  ;;  %v606_v51 = vadd.f32 %v1198_v9, %v349_v37  ;;  %v116_v33 = vld [vmem:[#allocation6 + $0x268] sm:$0xff] }
  0x47   :  { %v607_v52 = vadd.f32 %v1198_v9, %v350_v38  ;;  %v608_v53 = vadd.f32 %v1198_v9, %v351_v39  ;;  %857 = vst [vmem:[#allocation7 + $0x180] sm:$0xff] %v601_v43  ;;  %858 = vst [vmem:[#allocation7 + $0x188] sm:$0xff] %v602_v44  ;;  %v352_v54 = vmul.f32 %v1196_v8, %v95_v34  ;;  %v117_v34 = vld [vmem:[#allocation6 + $0x270] sm:$0xff]  ;;  %v119_v44 = vld [vmem:[#allocation6 + $0x280] sm:$0xff] }
  0x48   :  { %859 = vst [vmem:[#allocation7 + $0x190] sm:$0xff] %v603_v45  ;;  %860 = vst [vmem:[#allocation7 + $0x198] sm:$0xff] %v604_v46  ;;  %v353_v55 = vmul.f32 %v1196_v8, %v96_v35  ;;  %v354_v56 = vmul.f32 %v1196_v8, %v97_v40  ;;  %v355_v57 = vmul.f32 %v1196_v8, %v98_v41  ;;  %v118_v35 = vld [vmem:[#allocation6 + $0x278] sm:$0xff]  ;;  %v120_v45 = vld [vmem:[#allocation6 + $0x288] sm:$0xff] }
  0x49   :  { %861 = vst [vmem:[#allocation7 + $0x1a0] sm:$0xff] %v605_v50  ;;  %862 = vst [vmem:[#allocation7 + $0x1a8] sm:$0xff] %v606_v51  ;;  %v356_v60 = vmul.f32 %v1196_v8, %v99_v42  ;;  %v357_v61 = vmul.f32 %v1196_v8, %v100_v47  ;;  %v358_v62 = vmul.f32 %v1196_v8, %v101_v48  ;;  %v121_v50 = vld [vmem:[#allocation6 + $0x290] sm:$0xff]  ;;  %v122_v51 = vld [vmem:[#allocation6 + $0x298] sm:$0xff] }
  0x4a   :  { %863 = vst [vmem:[#allocation7 + $0x1b0] sm:$0xff] %v607_v52  ;;  %864 = vst [vmem:[#allocation7 + $0x1b8] sm:$0xff] %v608_v53  ;;  %v359_v63 = vmul.f32 %v1196_v8, %v102_v49  ;;  %v609_v3 = vadd.f32 %v1198_v9, %v352_v54  ;;  %v610_v4 = vadd.f32 %v1198_v9, %v353_v55  ;;  %v123_v52 = vld [vmem:[#allocation6 + $0x2a0] sm:$0xff] }
  0x4b   :  { %v611_v5 = vadd.f32 %v1198_v9, %v354_v56  ;;  %v612_v6 = vadd.f32 %v1198_v9, %v355_v57  ;;  %v613_v12 = vadd.f32 %v1198_v9, %v356_v60  ;;  %v614_v13 = vadd.f32 %v1198_v9, %v357_v61  ;;  %v124_v57 = vld [vmem:[#allocation6 + $0x2a8] sm:$0xff] }
  0x4c   :  { %v615_v14 = vadd.f32 %v1198_v9, %v358_v62  ;;  %v616_v15 = vadd.f32 %v1198_v9, %v359_v63  ;;  %865 = vst [vmem:[#allocation7 + $0x1c0] sm:$0xff] %v609_v3  ;;  %866 = vst [vmem:[#allocation7 + $0x1c8] sm:$0xff] %v610_v4  ;;  %v360_v16 = vmul.f32 %v1196_v8, %v103_v58  ;;  %v125_v58 = vld [vmem:[#allocation6 + $0x2b0] sm:$0xff]  ;;  %v127_v4 = vld [vmem:[#allocation6 + $0x2c0] sm:$0xff] }
  0x4d   :  { %867 = vst [vmem:[#allocation7 + $0x1d0] sm:$0xff] %v611_v5  ;;  %868 = vst [vmem:[#allocation7 + $0x1d8] sm:$0xff] %v612_v6  ;;  %v361_v17 = vmul.f32 %v1196_v8, %v104_v59  ;;  %v362_v18 = vmul.f32 %v1196_v8, %v105_v0  ;;  %v363_v19 = vmul.f32 %v1196_v8, %v106_v1  ;;  %v126_v59 = vld [vmem:[#allocation6 + $0x2b8] sm:$0xff]  ;;  %v128_v5 = vld [vmem:[#allocation6 + $0x2c8] sm:$0xff] }
  0x4e   :  { %869 = vst [vmem:[#allocation7 + $0x1e0] sm:$0xff] %v613_v12  ;;  %870 = vst [vmem:[#allocation7 + $0x1e8] sm:$0xff] %v614_v13  ;;  %v364_v22 = vmul.f32 %v1196_v8, %v107_v2  ;;  %v365_v23 = vmul.f32 %v1196_v8, %v108_v7  ;;  %v366_v24 = vmul.f32 %v1196_v8, %v109_v10  ;;  %v129_v12 = vld [vmem:[#allocation6 + $0x2d0] sm:$0xff]  ;;  %v130_v13 = vld [vmem:[#allocation6 + $0x2d8] sm:$0xff] }
  0x4f   :  { %871 = vst [vmem:[#allocation7 + $0x1f0] sm:$0xff] %v615_v14  ;;  %872 = vst [vmem:[#allocation7 + $0x1f8] sm:$0xff] %v616_v15  ;;  %v367_v25 = vmul.f32 %v1196_v8, %v110_v11  ;;  %v617_v29 = vadd.f32 %v1198_v9, %v360_v16  ;;  %v618_v30 = vadd.f32 %v1198_v9, %v361_v17  ;;  %v131_v14 = vld [vmem:[#allocation6 + $0x2e0] sm:$0xff] }
  0x50   :  { %v619_v31 = vadd.f32 %v1198_v9, %v362_v18  ;;  %v620_v32 = vadd.f32 %v1198_v9, %v363_v19  ;;  %v621_v36 = vadd.f32 %v1198_v9, %v364_v22  ;;  %v622_v37 = vadd.f32 %v1198_v9, %v365_v23  ;;  %v132_v19 = vld [vmem:[#allocation6 + $0x2e8] sm:$0xff] }
  0x51   :  { %v623_v38 = vadd.f32 %v1198_v9, %v366_v24  ;;  %v624_v39 = vadd.f32 %v1198_v9, %v367_v25  ;;  %873 = vst [vmem:[#allocation7 + $0x200] sm:$0xff] %v617_v29  ;;  %874 = vst [vmem:[#allocation7 + $0x208] sm:$0xff] %v618_v30  ;;  %v368_v40 = vmul.f32 %v1196_v8, %v111_v20  ;;  %v133_v20 = vld [vmem:[#allocation6 + $0x2f0] sm:$0xff]  ;;  %v135_v30 = vld [vmem:[#allocation6 + $0x300] sm:$0xff] }
  0x52   :  { %875 = vst [vmem:[#allocation7 + $0x210] sm:$0xff] %v619_v31  ;;  %876 = vst [vmem:[#allocation7 + $0x218] sm:$0xff] %v620_v32  ;;  %v369_v41 = vmul.f32 %v1196_v8, %v112_v21  ;;  %v370_v42 = vmul.f32 %v1196_v8, %v113_v26  ;;  %v371_v43 = vmul.f32 %v1196_v8, %v114_v27  ;;  %v134_v21 = vld [vmem:[#allocation6 + $0x2f8] sm:$0xff]  ;;  %v136_v31 = vld [vmem:[#allocation6 + $0x308] sm:$0xff] }
  0x53   :  { %877 = vst [vmem:[#allocation7 + $0x220] sm:$0xff] %v621_v36  ;;  %878 = vst [vmem:[#allocation7 + $0x228] sm:$0xff] %v622_v37  ;;  %v372_v46 = vmul.f32 %v1196_v8, %v115_v28  ;;  %v373_v47 = vmul.f32 %v1196_v8, %v116_v33  ;;  %v374_v48 = vmul.f32 %v1196_v8, %v117_v34  ;;  %v137_v36 = vld [vmem:[#allocation6 + $0x310] sm:$0xff]  ;;  %v138_v37 = vld [vmem:[#allocation6 + $0x318] sm:$0xff] }
  0x54   :  { %879 = vst [vmem:[#allocation7 + $0x230] sm:$0xff] %v623_v38  ;;  %880 = vst [vmem:[#allocation7 + $0x238] sm:$0xff] %v624_v39  ;;  %v375_v49 = vmul.f32 %v1196_v8, %v118_v35  ;;  %v625_v53 = vadd.f32 %v1198_v9, %v368_v40  ;;  %v626_v54 = vadd.f32 %v1198_v9, %v369_v41  ;;  %v139_v38 = vld [vmem:[#allocation6 + $0x320] sm:$0xff] }
  0x55   :  { %v627_v55 = vadd.f32 %v1198_v9, %v370_v42  ;;  %v628_v56 = vadd.f32 %v1198_v9, %v371_v43  ;;  %v629_v60 = vadd.f32 %v1198_v9, %v372_v46  ;;  %v630_v61 = vadd.f32 %v1198_v9, %v373_v47  ;;  %v140_v43 = vld [vmem:[#allocation6 + $0x328] sm:$0xff] }
  0x56   :  { %v631_v62 = vadd.f32 %v1198_v9, %v374_v48  ;;  %v632_v63 = vadd.f32 %v1198_v9, %v375_v49  ;;  %881 = vst [vmem:[#allocation7 + $0x240] sm:$0xff] %v625_v53  ;;  %882 = vst [vmem:[#allocation7 + $0x248] sm:$0xff] %v626_v54  ;;  %v376_v0 = vmul.f32 %v1196_v8, %v119_v44  ;;  %v141_v44 = vld [vmem:[#allocation6 + $0x330] sm:$0xff]  ;;  %v143_v54 = vld [vmem:[#allocation6 + $0x340] sm:$0xff] }
  0x57   :  { %883 = vst [vmem:[#allocation7 + $0x250] sm:$0xff] %v627_v55  ;;  %884 = vst [vmem:[#allocation7 + $0x258] sm:$0xff] %v628_v56  ;;  %v377_v1 = vmul.f32 %v1196_v8, %v120_v45  ;;  %v378_v2 = vmul.f32 %v1196_v8, %v121_v50  ;;  %v379_v3 = vmul.f32 %v1196_v8, %v122_v51  ;;  %v142_v45 = vld [vmem:[#allocation6 + $0x338] sm:$0xff]  ;;  %v144_v55 = vld [vmem:[#allocation6 + $0x348] sm:$0xff] }
  0x58   :  { %885 = vst [vmem:[#allocation7 + $0x260] sm:$0xff] %v629_v60  ;;  %886 = vst [vmem:[#allocation7 + $0x268] sm:$0xff] %v630_v61  ;;  %v380_v6 = vmul.f32 %v1196_v8, %v123_v52  ;;  %v381_v7 = vmul.f32 %v1196_v8, %v124_v57  ;;  %v382_v10 = vmul.f32 %v1196_v8, %v125_v58  ;;  %v145_v60 = vld [vmem:[#allocation6 + $0x350] sm:$0xff]  ;;  %v146_v61 = vld [vmem:[#allocation6 + $0x358] sm:$0xff] }
  0x59   :  { %887 = vst [vmem:[#allocation7 + $0x270] sm:$0xff] %v631_v62  ;;  %888 = vst [vmem:[#allocation7 + $0x278] sm:$0xff] %v632_v63  ;;  %v383_v11 = vmul.f32 %v1196_v8, %v126_v59  ;;  %v633_v15 = vadd.f32 %v1198_v9, %v376_v0  ;;  %v634_v16 = vadd.f32 %v1198_v9, %v377_v1  ;;  %v147_v62 = vld [vmem:[#allocation6 + $0x360] sm:$0xff] }
  0x5a   :  { %v635_v17 = vadd.f32 %v1198_v9, %v378_v2  ;;  %v636_v18 = vadd.f32 %v1198_v9, %v379_v3  ;;  %v637_v22 = vadd.f32 %v1198_v9, %v380_v6  ;;  %v638_v23 = vadd.f32 %v1198_v9, %v381_v7  ;;  %v148_v3 = vld [vmem:[#allocation6 + $0x368] sm:$0xff] }
  0x5b   :  { %v639_v24 = vadd.f32 %v1198_v9, %v382_v10  ;;  %v640_v25 = vadd.f32 %v1198_v9, %v383_v11  ;;  %889 = vst [vmem:[#allocation7 + $0x280] sm:$0xff] %v633_v15  ;;  %890 = vst [vmem:[#allocation7 + $0x288] sm:$0xff] %v634_v16  ;;  %v384_v26 = vmul.f32 %v1196_v8, %v127_v4  ;;  %v149_v4 = vld [vmem:[#allocation6 + $0x370] sm:$0xff]  ;;  %v151_v16 = vld [vmem:[#allocation6 + $0x380] sm:$0xff] }
  0x5c   :  { %891 = vst [vmem:[#allocation7 + $0x290] sm:$0xff] %v635_v17  ;;  %892 = vst [vmem:[#allocation7 + $0x298] sm:$0xff] %v636_v18  ;;  %v385_v27 = vmul.f32 %v1196_v8, %v128_v5  ;;  %v386_v28 = vmul.f32 %v1196_v8, %v129_v12  ;;  %v387_v29 = vmul.f32 %v1196_v8, %v130_v13  ;;  %v150_v5 = vld [vmem:[#allocation6 + $0x378] sm:$0xff]  ;;  %v152_v17 = vld [vmem:[#allocation6 + $0x388] sm:$0xff] }
  0x5d   :  { %893 = vst [vmem:[#allocation7 + $0x2a0] sm:$0xff] %v637_v22  ;;  %894 = vst [vmem:[#allocation7 + $0x2a8] sm:$0xff] %v638_v23  ;;  %v388_v32 = vmul.f32 %v1196_v8, %v131_v14  ;;  %v389_v33 = vmul.f32 %v1196_v8, %v132_v19  ;;  %v390_v34 = vmul.f32 %v1196_v8, %v133_v20  ;;  %v153_v22 = vld [vmem:[#allocation6 + $0x390] sm:$0xff]  ;;  %v154_v23 = vld [vmem:[#allocation6 + $0x398] sm:$0xff] }
  0x5e   :  { %895 = vst [vmem:[#allocation7 + $0x2b0] sm:$0xff] %v639_v24  ;;  %896 = vst [vmem:[#allocation7 + $0x2b8] sm:$0xff] %v640_v25  ;;  %v391_v35 = vmul.f32 %v1196_v8, %v134_v21  ;;  %v641_v39 = vadd.f32 %v1198_v9, %v384_v26  ;;  %v642_v40 = vadd.f32 %v1198_v9, %v385_v27  ;;  %v155_v24 = vld [vmem:[#allocation6 + $0x3a0] sm:$0xff] }
  0x5f   :  { %v643_v41 = vadd.f32 %v1198_v9, %v386_v28  ;;  %v644_v42 = vadd.f32 %v1198_v9, %v387_v29  ;;  %v645_v46 = vadd.f32 %v1198_v9, %v388_v32  ;;  %v646_v47 = vadd.f32 %v1198_v9, %v389_v33  ;;  %v156_v29 = vld [vmem:[#allocation6 + $0x3a8] sm:$0xff] }
  0x60   :  { %v647_v48 = vadd.f32 %v1198_v9, %v390_v34  ;;  %v648_v49 = vadd.f32 %v1198_v9, %v391_v35  ;;  %897 = vst [vmem:[#allocation7 + $0x2c0] sm:$0xff] %v641_v39  ;;  %898 = vst [vmem:[#allocation7 + $0x2c8] sm:$0xff] %v642_v40  ;;  %v392_v50 = vmul.f32 %v1196_v8, %v135_v30  ;;  %v157_v30 = vld [vmem:[#allocation6 + $0x3b0] sm:$0xff]  ;;  %v159_v40 = vld [vmem:[#allocation6 + $0x3c0] sm:$0xff] }
  0x61   :  { %899 = vst [vmem:[#allocation7 + $0x2d0] sm:$0xff] %v643_v41  ;;  %900 = vst [vmem:[#allocation7 + $0x2d8] sm:$0xff] %v644_v42  ;;  %v393_v51 = vmul.f32 %v1196_v8, %v136_v31  ;;  %v394_v52 = vmul.f32 %v1196_v8, %v137_v36  ;;  %v395_v53 = vmul.f32 %v1196_v8, %v138_v37  ;;  %v158_v31 = vld [vmem:[#allocation6 + $0x3b8] sm:$0xff]  ;;  %v160_v41 = vld [vmem:[#allocation6 + $0x3c8] sm:$0xff] }
  0x62   :  { %901 = vst [vmem:[#allocation7 + $0x2e0] sm:$0xff] %v645_v46  ;;  %902 = vst [vmem:[#allocation7 + $0x2e8] sm:$0xff] %v646_v47  ;;  %v396_v56 = vmul.f32 %v1196_v8, %v139_v38  ;;  %v397_v57 = vmul.f32 %v1196_v8, %v140_v43  ;;  %v398_v58 = vmul.f32 %v1196_v8, %v141_v44  ;;  %v161_v46 = vld [vmem:[#allocation6 + $0x3d0] sm:$0xff]  ;;  %v162_v47 = vld [vmem:[#allocation6 + $0x3d8] sm:$0xff] }
  0x63   :  { %903 = vst [vmem:[#allocation7 + $0x2f0] sm:$0xff] %v647_v48  ;;  %904 = vst [vmem:[#allocation7 + $0x2f8] sm:$0xff] %v648_v49  ;;  %v399_v59 = vmul.f32 %v1196_v8, %v142_v45  ;;  %v649_v63 = vadd.f32 %v1198_v9, %v392_v50  ;;  %v650_v0 = vadd.f32 %v1198_v9, %v393_v51  ;;  %v163_v48 = vld [vmem:[#allocation6 + $0x3e0] sm:$0xff] }
  0x64   :  { %v651_v1 = vadd.f32 %v1198_v9, %v394_v52  ;;  %v652_v2 = vadd.f32 %v1198_v9, %v395_v53  ;;  %v653_v6 = vadd.f32 %v1198_v9, %v396_v56  ;;  %v654_v7 = vadd.f32 %v1198_v9, %v397_v57  ;;  %v164_v53 = vld [vmem:[#allocation6 + $0x3e8] sm:$0xff] }
  0x65   :  { %v655_v10 = vadd.f32 %v1198_v9, %v398_v58  ;;  %v656_v11 = vadd.f32 %v1198_v9, %v399_v59  ;;  %905 = vst [vmem:[#allocation7 + $0x300] sm:$0xff] %v649_v63  ;;  %906 = vst [vmem:[#allocation7 + $0x308] sm:$0xff] %v650_v0  ;;  %v400_v12 = vmul.f32 %v1196_v8, %v143_v54  ;;  %v165_v54 = vld [vmem:[#allocation6 + $0x3f0] sm:$0xff]  ;;  %v167_v0 = vld [vmem:[#allocation6 + $0x400] sm:$0xff] }
  0x66   :  { %907 = vst [vmem:[#allocation7 + $0x310] sm:$0xff] %v651_v1  ;;  %908 = vst [vmem:[#allocation7 + $0x318] sm:$0xff] %v652_v2  ;;  %v401_v13 = vmul.f32 %v1196_v8, %v144_v55  ;;  %v402_v14 = vmul.f32 %v1196_v8, %v145_v60  ;;  %v403_v15 = vmul.f32 %v1196_v8, %v146_v61  ;;  %v166_v55 = vld [vmem:[#allocation6 + $0x3f8] sm:$0xff]  ;;  %v168_v1 = vld [vmem:[#allocation6 + $0x408] sm:$0xff] }
  0x67   :  { %909 = vst [vmem:[#allocation7 + $0x320] sm:$0xff] %v653_v6  ;;  %910 = vst [vmem:[#allocation7 + $0x328] sm:$0xff] %v654_v7  ;;  %v404_v18 = vmul.f32 %v1196_v8, %v147_v62  ;;  %v405_v19 = vmul.f32 %v1196_v8, %v148_v3  ;;  %v406_v20 = vmul.f32 %v1196_v8, %v149_v4  ;;  %v169_v6 = vld [vmem:[#allocation6 + $0x410] sm:$0xff]  ;;  %v170_v7 = vld [vmem:[#allocation6 + $0x418] sm:$0xff] }
  0x68   :  { %911 = vst [vmem:[#allocation7 + $0x330] sm:$0xff] %v655_v10  ;;  %912 = vst [vmem:[#allocation7 + $0x338] sm:$0xff] %v656_v11  ;;  %v407_v21 = vmul.f32 %v1196_v8, %v150_v5  ;;  %v657_v25 = vadd.f32 %v1198_v9, %v400_v12  ;;  %v658_v26 = vadd.f32 %v1198_v9, %v401_v13  ;;  %v171_v10 = vld [vmem:[#allocation6 + $0x420] sm:$0xff] }
  0x69   :  { %v659_v27 = vadd.f32 %v1198_v9, %v402_v14  ;;  %v660_v28 = vadd.f32 %v1198_v9, %v403_v15  ;;  %v661_v32 = vadd.f32 %v1198_v9, %v404_v18  ;;  %v662_v33 = vadd.f32 %v1198_v9, %v405_v19  ;;  %v172_v15 = vld [vmem:[#allocation6 + $0x428] sm:$0xff] }
  0x6a   :  { %v663_v34 = vadd.f32 %v1198_v9, %v406_v20  ;;  %v664_v35 = vadd.f32 %v1198_v9, %v407_v21  ;;  %913 = vst [vmem:[#allocation7 + $0x340] sm:$0xff] %v657_v25  ;;  %914 = vst [vmem:[#allocation7 + $0x348] sm:$0xff] %v658_v26  ;;  %v408_v36 = vmul.f32 %v1196_v8, %v151_v16  ;;  %v173_v16 = vld [vmem:[#allocation6 + $0x430] sm:$0xff]  ;;  %v175_v26 = vld [vmem:[#allocation6 + $0x440] sm:$0xff] }
  0x6b   :  { %915 = vst [vmem:[#allocation7 + $0x350] sm:$0xff] %v659_v27  ;;  %916 = vst [vmem:[#allocation7 + $0x358] sm:$0xff] %v660_v28  ;;  %v409_v37 = vmul.f32 %v1196_v8, %v152_v17  ;;  %v410_v38 = vmul.f32 %v1196_v8, %v153_v22  ;;  %v411_v39 = vmul.f32 %v1196_v8, %v154_v23  ;;  %v174_v17 = vld [vmem:[#allocation6 + $0x438] sm:$0xff]  ;;  %v176_v27 = vld [vmem:[#allocation6 + $0x448] sm:$0xff] }
  0x6c   :  { %917 = vst [vmem:[#allocation7 + $0x360] sm:$0xff] %v661_v32  ;;  %918 = vst [vmem:[#allocation7 + $0x368] sm:$0xff] %v662_v33  ;;  %v412_v42 = vmul.f32 %v1196_v8, %v155_v24  ;;  %v413_v43 = vmul.f32 %v1196_v8, %v156_v29  ;;  %v414_v44 = vmul.f32 %v1196_v8, %v157_v30  ;;  %v177_v32 = vld [vmem:[#allocation6 + $0x450] sm:$0xff]  ;;  %v178_v33 = vld [vmem:[#allocation6 + $0x458] sm:$0xff] }
  0x6d   :  { %919 = vst [vmem:[#allocation7 + $0x370] sm:$0xff] %v663_v34  ;;  %920 = vst [vmem:[#allocation7 + $0x378] sm:$0xff] %v664_v35  ;;  %v415_v45 = vmul.f32 %v1196_v8, %v158_v31  ;;  %v665_v49 = vadd.f32 %v1198_v9, %v408_v36  ;;  %v666_v50 = vadd.f32 %v1198_v9, %v409_v37  ;;  %v179_v34 = vld [vmem:[#allocation6 + $0x460] sm:$0xff] }
  0x6e   :  { %v667_v51 = vadd.f32 %v1198_v9, %v410_v38  ;;  %v668_v52 = vadd.f32 %v1198_v9, %v411_v39  ;;  %v669_v56 = vadd.f32 %v1198_v9, %v412_v42  ;;  %v670_v57 = vadd.f32 %v1198_v9, %v413_v43  ;;  %v180_v39 = vld [vmem:[#allocation6 + $0x468] sm:$0xff] }
  0x6f   :  { %v671_v58 = vadd.f32 %v1198_v9, %v414_v44  ;;  %v672_v59 = vadd.f32 %v1198_v9, %v415_v45  ;;  %921 = vst [vmem:[#allocation7 + $0x380] sm:$0xff] %v665_v49  ;;  %922 = vst [vmem:[#allocation7 + $0x388] sm:$0xff] %v666_v50  ;;  %v416_v60 = vmul.f32 %v1196_v8, %v159_v40  ;;  %v181_v40 = vld [vmem:[#allocation6 + $0x470] sm:$0xff]  ;;  %v183_v50 = vld [vmem:[#allocation6 + $0x480] sm:$0xff] }
  0x70   :  { %923 = vst [vmem:[#allocation7 + $0x390] sm:$0xff] %v667_v51  ;;  %924 = vst [vmem:[#allocation7 + $0x398] sm:$0xff] %v668_v52  ;;  %v417_v61 = vmul.f32 %v1196_v8, %v160_v41  ;;  %v418_v62 = vmul.f32 %v1196_v8, %v161_v46  ;;  %v419_v63 = vmul.f32 %v1196_v8, %v162_v47  ;;  %v182_v41 = vld [vmem:[#allocation6 + $0x478] sm:$0xff]  ;;  %v184_v51 = vld [vmem:[#allocation6 + $0x488] sm:$0xff] }
  0x71   :  { %925 = vst [vmem:[#allocation7 + $0x3a0] sm:$0xff] %v669_v56  ;;  %926 = vst [vmem:[#allocation7 + $0x3a8] sm:$0xff] %v670_v57  ;;  %v420_v2 = vmul.f32 %v1196_v8, %v163_v48  ;;  %v421_v3 = vmul.f32 %v1196_v8, %v164_v53  ;;  %v422_v4 = vmul.f32 %v1196_v8, %v165_v54  ;;  %v185_v56 = vld [vmem:[#allocation6 + $0x490] sm:$0xff]  ;;  %v186_v57 = vld [vmem:[#allocation6 + $0x498] sm:$0xff] }
  0x72   :  { %927 = vst [vmem:[#allocation7 + $0x3b0] sm:$0xff] %v671_v58  ;;  %928 = vst [vmem:[#allocation7 + $0x3b8] sm:$0xff] %v672_v59  ;;  %v423_v5 = vmul.f32 %v1196_v8, %v166_v55  ;;  %v673_v11 = vadd.f32 %v1198_v9, %v416_v60  ;;  %v674_v12 = vadd.f32 %v1198_v9, %v417_v61  ;;  %v187_v58 = vld [vmem:[#allocation6 + $0x4a0] sm:$0xff] }
  0x73   :  { %v675_v13 = vadd.f32 %v1198_v9, %v418_v62  ;;  %v676_v14 = vadd.f32 %v1198_v9, %v419_v63  ;;  %v677_v18 = vadd.f32 %v1198_v9, %v420_v2  ;;  %v678_v19 = vadd.f32 %v1198_v9, %v421_v3  ;;  %v188_v63 = vld [vmem:[#allocation6 + $0x4a8] sm:$0xff] }
  0x74   :  { %v679_v20 = vadd.f32 %v1198_v9, %v422_v4  ;;  %v680_v21 = vadd.f32 %v1198_v9, %v423_v5  ;;  %929 = vst [vmem:[#allocation7 + $0x3c0] sm:$0xff] %v673_v11  ;;  %930 = vst [vmem:[#allocation7 + $0x3c8] sm:$0xff] %v674_v12  ;;  %v424_v22 = vmul.f32 %v1196_v8, %v167_v0  ;;  %v189_v0 = vld [vmem:[#allocation6 + $0x4b0] sm:$0xff]  ;;  %v191_v12 = vld [vmem:[#allocation6 + $0x4c0] sm:$0xff] }
  0x75   :  { %931 = vst [vmem:[#allocation7 + $0x3d0] sm:$0xff] %v675_v13  ;;  %932 = vst [vmem:[#allocation7 + $0x3d8] sm:$0xff] %v676_v14  ;;  %v425_v23 = vmul.f32 %v1196_v8, %v168_v1  ;;  %v426_v24 = vmul.f32 %v1196_v8, %v169_v6  ;;  %v427_v25 = vmul.f32 %v1196_v8, %v170_v7  ;;  %v190_v1 = vld [vmem:[#allocation6 + $0x4b8] sm:$0xff]  ;;  %v192_v13 = vld [vmem:[#allocation6 + $0x4c8] sm:$0xff] }
  0x76   :  { %933 = vst [vmem:[#allocation7 + $0x3e0] sm:$0xff] %v677_v18  ;;  %934 = vst [vmem:[#allocation7 + $0x3e8] sm:$0xff] %v678_v19  ;;  %v428_v28 = vmul.f32 %v1196_v8, %v171_v10  ;;  %v429_v29 = vmul.f32 %v1196_v8, %v172_v15  ;;  %v430_v30 = vmul.f32 %v1196_v8, %v173_v16  ;;  %v193_v18 = vld [vmem:[#allocation6 + $0x4d0] sm:$0xff]  ;;  %v194_v19 = vld [vmem:[#allocation6 + $0x4d8] sm:$0xff] }
  0x77   :  { %935 = vst [vmem:[#allocation7 + $0x3f0] sm:$0xff] %v679_v20  ;;  %936 = vst [vmem:[#allocation7 + $0x3f8] sm:$0xff] %v680_v21  ;;  %v431_v31 = vmul.f32 %v1196_v8, %v174_v17  ;;  %v681_v35 = vadd.f32 %v1198_v9, %v424_v22  ;;  %v682_v36 = vadd.f32 %v1198_v9, %v425_v23  ;;  %v195_v20 = vld [vmem:[#allocation6 + $0x4e0] sm:$0xff] }
  0x78   :  { %v683_v37 = vadd.f32 %v1198_v9, %v426_v24  ;;  %v684_v38 = vadd.f32 %v1198_v9, %v427_v25  ;;  %v685_v42 = vadd.f32 %v1198_v9, %v428_v28  ;;  %v686_v43 = vadd.f32 %v1198_v9, %v429_v29  ;;  %v196_v25 = vld [vmem:[#allocation6 + $0x4e8] sm:$0xff] }
  0x79   :  { %v687_v44 = vadd.f32 %v1198_v9, %v430_v30  ;;  %v688_v45 = vadd.f32 %v1198_v9, %v431_v31  ;;  %937 = vst [vmem:[#allocation7 + $0x400] sm:$0xff] %v681_v35  ;;  %938 = vst [vmem:[#allocation7 + $0x408] sm:$0xff] %v682_v36  ;;  %v432_v46 = vmul.f32 %v1196_v8, %v175_v26  ;;  %v197_v26 = vld [vmem:[#allocation6 + $0x4f0] sm:$0xff]  ;;  %v199_v36 = vld [vmem:[#allocation6 + $0x500] sm:$0xff] }
  0x7a   :  { %939 = vst [vmem:[#allocation7 + $0x410] sm:$0xff] %v683_v37  ;;  %940 = vst [vmem:[#allocation7 + $0x418] sm:$0xff] %v684_v38  ;;  %v433_v47 = vmul.f32 %v1196_v8, %v176_v27  ;;  %v434_v48 = vmul.f32 %v1196_v8, %v177_v32  ;;  %v435_v49 = vmul.f32 %v1196_v8, %v178_v33  ;;  %v198_v27 = vld [vmem:[#allocation6 + $0x4f8] sm:$0xff]  ;;  %v200_v37 = vld [vmem:[#allocation6 + $0x508] sm:$0xff] }
  0x7b   :  { %941 = vst [vmem:[#allocation7 + $0x420] sm:$0xff] %v685_v42  ;;  %942 = vst [vmem:[#allocation7 + $0x428] sm:$0xff] %v686_v43  ;;  %v436_v52 = vmul.f32 %v1196_v8, %v179_v34  ;;  %v437_v53 = vmul.f32 %v1196_v8, %v180_v39  ;;  %v438_v54 = vmul.f32 %v1196_v8, %v181_v40  ;;  %v201_v42 = vld [vmem:[#allocation6 + $0x510] sm:$0xff]  ;;  %v202_v43 = vld [vmem:[#allocation6 + $0x518] sm:$0xff] }
  0x7c   :  { %943 = vst [vmem:[#allocation7 + $0x430] sm:$0xff] %v687_v44  ;;  %944 = vst [vmem:[#allocation7 + $0x438] sm:$0xff] %v688_v45  ;;  %v439_v55 = vmul.f32 %v1196_v8, %v182_v41  ;;  %v689_v59 = vadd.f32 %v1198_v9, %v432_v46  ;;  %v690_v60 = vadd.f32 %v1198_v9, %v433_v47  ;;  %v203_v44 = vld [vmem:[#allocation6 + $0x520] sm:$0xff] }
  0x7d   :  { %v691_v61 = vadd.f32 %v1198_v9, %v434_v48  ;;  %v692_v62 = vadd.f32 %v1198_v9, %v435_v49  ;;  %v693_v2 = vadd.f32 %v1198_v9, %v436_v52  ;;  %v694_v3 = vadd.f32 %v1198_v9, %v437_v53  ;;  %v204_v49 = vld [vmem:[#allocation6 + $0x528] sm:$0xff] }
  0x7e   :  { %v695_v4 = vadd.f32 %v1198_v9, %v438_v54  ;;  %v696_v5 = vadd.f32 %v1198_v9, %v439_v55  ;;  %945 = vst [vmem:[#allocation7 + $0x440] sm:$0xff] %v689_v59  ;;  %946 = vst [vmem:[#allocation7 + $0x448] sm:$0xff] %v690_v60  ;;  %v440_v6 = vmul.f32 %v1196_v8, %v183_v50  ;;  %v205_v50 = vld [vmem:[#allocation6 + $0x530] sm:$0xff]  ;;  %v207_v60 = vld [vmem:[#allocation6 + $0x540] sm:$0xff] }
  0x7f   :  { %947 = vst [vmem:[#allocation7 + $0x450] sm:$0xff] %v691_v61  ;;  %948 = vst [vmem:[#allocation7 + $0x458] sm:$0xff] %v692_v62  ;;  %v441_v7 = vmul.f32 %v1196_v8, %v184_v51  ;;  %v442_v10 = vmul.f32 %v1196_v8, %v185_v56  ;;  %v443_v11 = vmul.f32 %v1196_v8, %v186_v57  ;;  %v206_v51 = vld [vmem:[#allocation6 + $0x538] sm:$0xff]  ;;  %v208_v61 = vld [vmem:[#allocation6 + $0x548] sm:$0xff] }
  0x80   :  { %949 = vst [vmem:[#allocation7 + $0x460] sm:$0xff] %v693_v2  ;;  %950 = vst [vmem:[#allocation7 + $0x468] sm:$0xff] %v694_v3  ;;  %v444_v14 = vmul.f32 %v1196_v8, %v187_v58  ;;  %v445_v15 = vmul.f32 %v1196_v8, %v188_v63  ;;  %v446_v16 = vmul.f32 %v1196_v8, %v189_v0  ;;  %v209_v2 = vld [vmem:[#allocation6 + $0x550] sm:$0xff]  ;;  %v210_v3 = vld [vmem:[#allocation6 + $0x558] sm:$0xff] }
  0x81   :  { %951 = vst [vmem:[#allocation7 + $0x470] sm:$0xff] %v695_v4  ;;  %952 = vst [vmem:[#allocation7 + $0x478] sm:$0xff] %v696_v5  ;;  %v447_v17 = vmul.f32 %v1196_v8, %v190_v1  ;;  %v697_v21 = vadd.f32 %v1198_v9, %v440_v6  ;;  %v698_v22 = vadd.f32 %v1198_v9, %v441_v7  ;;  %v211_v4 = vld [vmem:[#allocation6 + $0x560] sm:$0xff] }
  0x82   :  { %v699_v23 = vadd.f32 %v1198_v9, %v442_v10  ;;  %v700_v24 = vadd.f32 %v1198_v9, %v443_v11  ;;  %v701_v28 = vadd.f32 %v1198_v9, %v444_v14  ;;  %v702_v29 = vadd.f32 %v1198_v9, %v445_v15  ;;  %v212_v11 = vld [vmem:[#allocation6 + $0x568] sm:$0xff] }
  0x83   :  { %v703_v30 = vadd.f32 %v1198_v9, %v446_v16  ;;  %v704_v31 = vadd.f32 %v1198_v9, %v447_v17  ;;  %953 = vst [vmem:[#allocation7 + $0x480] sm:$0xff] %v697_v21  ;;  %954 = vst [vmem:[#allocation7 + $0x488] sm:$0xff] %v698_v22  ;;  %v448_v32 = vmul.f32 %v1196_v8, %v191_v12  ;;  %v213_v12 = vld [vmem:[#allocation6 + $0x570] sm:$0xff]  ;;  %v215_v22 = vld [vmem:[#allocation6 + $0x580] sm:$0xff] }
  0x84   :  { %955 = vst [vmem:[#allocation7 + $0x490] sm:$0xff] %v699_v23  ;;  %956 = vst [vmem:[#allocation7 + $0x498] sm:$0xff] %v700_v24  ;;  %v449_v33 = vmul.f32 %v1196_v8, %v192_v13  ;;  %v450_v34 = vmul.f32 %v1196_v8, %v193_v18  ;;  %v451_v35 = vmul.f32 %v1196_v8, %v194_v19  ;;  %v214_v13 = vld [vmem:[#allocation6 + $0x578] sm:$0xff]  ;;  %v216_v23 = vld [vmem:[#allocation6 + $0x588] sm:$0xff] }
  0x85   :  { %957 = vst [vmem:[#allocation7 + $0x4a0] sm:$0xff] %v701_v28  ;;  %958 = vst [vmem:[#allocation7 + $0x4a8] sm:$0xff] %v702_v29  ;;  %v452_v38 = vmul.f32 %v1196_v8, %v195_v20  ;;  %v453_v39 = vmul.f32 %v1196_v8, %v196_v25  ;;  %v454_v40 = vmul.f32 %v1196_v8, %v197_v26  ;;  %v217_v28 = vld [vmem:[#allocation6 + $0x590] sm:$0xff]  ;;  %v218_v29 = vld [vmem:[#allocation6 + $0x598] sm:$0xff] }
  0x86   :  { %959 = vst [vmem:[#allocation7 + $0x4b0] sm:$0xff] %v703_v30  ;;  %960 = vst [vmem:[#allocation7 + $0x4b8] sm:$0xff] %v704_v31  ;;  %v455_v41 = vmul.f32 %v1196_v8, %v198_v27  ;;  %v705_v45 = vadd.f32 %v1198_v9, %v448_v32  ;;  %v706_v46 = vadd.f32 %v1198_v9, %v449_v33  ;;  %v219_v30 = vld [vmem:[#allocation6 + $0x5a0] sm:$0xff] }
  0x87   :  { %v707_v47 = vadd.f32 %v1198_v9, %v450_v34  ;;  %v708_v48 = vadd.f32 %v1198_v9, %v451_v35  ;;  %v709_v52 = vadd.f32 %v1198_v9, %v452_v38  ;;  %v710_v53 = vadd.f32 %v1198_v9, %v453_v39  ;;  %v220_v35 = vld [vmem:[#allocation6 + $0x5a8] sm:$0xff] }
  0x88   :  { %v711_v54 = vadd.f32 %v1198_v9, %v454_v40  ;;  %v712_v55 = vadd.f32 %v1198_v9, %v455_v41  ;;  %961 = vst [vmem:[#allocation7 + $0x4c0] sm:$0xff] %v705_v45  ;;  %962 = vst [vmem:[#allocation7 + $0x4c8] sm:$0xff] %v706_v46  ;;  %v456_v56 = vmul.f32 %v1196_v8, %v199_v36  ;;  %v221_v36 = vld [vmem:[#allocation6 + $0x5b0] sm:$0xff]  ;;  %v223_v46 = vld [vmem:[#allocation6 + $0x5c0] sm:$0xff] }
  0x89   :  { %963 = vst [vmem:[#allocation7 + $0x4d0] sm:$0xff] %v707_v47  ;;  %964 = vst [vmem:[#allocation7 + $0x4d8] sm:$0xff] %v708_v48  ;;  %v457_v57 = vmul.f32 %v1196_v8, %v200_v37  ;;  %v458_v58 = vmul.f32 %v1196_v8, %v201_v42  ;;  %v459_v59 = vmul.f32 %v1196_v8, %v202_v43  ;;  %v222_v37 = vld [vmem:[#allocation6 + $0x5b8] sm:$0xff]  ;;  %v224_v47 = vld [vmem:[#allocation6 + $0x5c8] sm:$0xff] }
  0x8a   :  { %965 = vst [vmem:[#allocation7 + $0x4e0] sm:$0xff] %v709_v52  ;;  %966 = vst [vmem:[#allocation7 + $0x4e8] sm:$0xff] %v710_v53  ;;  %v460_v62 = vmul.f32 %v1196_v8, %v203_v44  ;;  %v461_v63 = vmul.f32 %v1196_v8, %v204_v49  ;;  %v462_v0 = vmul.f32 %v1196_v8, %v205_v50  ;;  %v225_v52 = vld [vmem:[#allocation6 + $0x5d0] sm:$0xff]  ;;  %v226_v53 = vld [vmem:[#allocation6 + $0x5d8] sm:$0xff] }
  0x8b   :  { %967 = vst [vmem:[#allocation7 + $0x4f0] sm:$0xff] %v711_v54  ;;  %968 = vst [vmem:[#allocation7 + $0x4f8] sm:$0xff] %v712_v55  ;;  %v463_v1 = vmul.f32 %v1196_v8, %v206_v51  ;;  %v713_v5 = vadd.f32 %v1198_v9, %v456_v56  ;;  %v714_v6 = vadd.f32 %v1198_v9, %v457_v57  ;;  %v227_v54 = vld [vmem:[#allocation6 + $0x5e0] sm:$0xff] }
  0x8c   :  { %v715_v7 = vadd.f32 %v1198_v9, %v458_v58  ;;  %v716_v10 = vadd.f32 %v1198_v9, %v459_v59  ;;  %v717_v14 = vadd.f32 %v1198_v9, %v460_v62  ;;  %v718_v15 = vadd.f32 %v1198_v9, %v461_v63  ;;  %v228_v59 = vld [vmem:[#allocation6 + $0x5e8] sm:$0xff] }
  0x8d   :  { %v719_v16 = vadd.f32 %v1198_v9, %v462_v0  ;;  %v720_v17 = vadd.f32 %v1198_v9, %v463_v1  ;;  %969 = vst [vmem:[#allocation7 + $0x500] sm:$0xff] %v713_v5  ;;  %970 = vst [vmem:[#allocation7 + $0x508] sm:$0xff] %v714_v6  ;;  %v464_v18 = vmul.f32 %v1196_v8, %v207_v60  ;;  %v229_v60 = vld [vmem:[#allocation6 + $0x5f0] sm:$0xff]  ;;  %v231_v6 = vld [vmem:[#allocation6 + $0x600] sm:$0xff] }
  0x8e   :  { %971 = vst [vmem:[#allocation7 + $0x510] sm:$0xff] %v715_v7  ;;  %972 = vst [vmem:[#allocation7 + $0x518] sm:$0xff] %v716_v10  ;;  %v465_v19 = vmul.f32 %v1196_v8, %v208_v61  ;;  %v466_v20 = vmul.f32 %v1196_v8, %v209_v2  ;;  %v467_v21 = vmul.f32 %v1196_v8, %v210_v3  ;;  %v230_v61 = vld [vmem:[#allocation6 + $0x5f8] sm:$0xff]  ;;  %v232_v7 = vld [vmem:[#allocation6 + $0x608] sm:$0xff] }
  0x8f   :  { %973 = vst [vmem:[#allocation7 + $0x520] sm:$0xff] %v717_v14  ;;  %974 = vst [vmem:[#allocation7 + $0x528] sm:$0xff] %v718_v15  ;;  %v468_v24 = vmul.f32 %v1196_v8, %v211_v4  ;;  %v469_v25 = vmul.f32 %v1196_v8, %v212_v11  ;;  %v470_v26 = vmul.f32 %v1196_v8, %v213_v12  ;;  %v233_v14 = vld [vmem:[#allocation6 + $0x610] sm:$0xff]  ;;  %v234_v15 = vld [vmem:[#allocation6 + $0x618] sm:$0xff] }
  0x90   :  { %975 = vst [vmem:[#allocation7 + $0x530] sm:$0xff] %v719_v16  ;;  %976 = vst [vmem:[#allocation7 + $0x538] sm:$0xff] %v720_v17  ;;  %v471_v27 = vmul.f32 %v1196_v8, %v214_v13  ;;  %v721_v31 = vadd.f32 %v1198_v9, %v464_v18  ;;  %v722_v32 = vadd.f32 %v1198_v9, %v465_v19  ;;  %v235_v16 = vld [vmem:[#allocation6 + $0x620] sm:$0xff] }
  0x91   :  { %v723_v33 = vadd.f32 %v1198_v9, %v466_v20  ;;  %v724_v34 = vadd.f32 %v1198_v9, %v467_v21  ;;  %v725_v38 = vadd.f32 %v1198_v9, %v468_v24  ;;  %v726_v39 = vadd.f32 %v1198_v9, %v469_v25  ;;  %v236_v21 = vld [vmem:[#allocation6 + $0x628] sm:$0xff] }
  0x92   :  { %v727_v40 = vadd.f32 %v1198_v9, %v470_v26  ;;  %v728_v41 = vadd.f32 %v1198_v9, %v471_v27  ;;  %977 = vst [vmem:[#allocation7 + $0x540] sm:$0xff] %v721_v31  ;;  %978 = vst [vmem:[#allocation7 + $0x548] sm:$0xff] %v722_v32  ;;  %v472_v42 = vmul.f32 %v1196_v8, %v215_v22  ;;  %v237_v22 = vld [vmem:[#allocation6 + $0x630] sm:$0xff]  ;;  %v239_v32 = vld [vmem:[#allocation6 + $0x640] sm:$0xff] }
  0x93   :  { %979 = vst [vmem:[#allocation7 + $0x550] sm:$0xff] %v723_v33  ;;  %980 = vst [vmem:[#allocation7 + $0x558] sm:$0xff] %v724_v34  ;;  %v473_v43 = vmul.f32 %v1196_v8, %v216_v23  ;;  %v474_v44 = vmul.f32 %v1196_v8, %v217_v28  ;;  %v475_v45 = vmul.f32 %v1196_v8, %v218_v29  ;;  %v238_v23 = vld [vmem:[#allocation6 + $0x638] sm:$0xff]  ;;  %v240_v33 = vld [vmem:[#allocation6 + $0x648] sm:$0xff] }
  0x94   :  { %981 = vst [vmem:[#allocation7 + $0x560] sm:$0xff] %v725_v38  ;;  %982 = vst [vmem:[#allocation7 + $0x568] sm:$0xff] %v726_v39  ;;  %v476_v48 = vmul.f32 %v1196_v8, %v219_v30  ;;  %v477_v49 = vmul.f32 %v1196_v8, %v220_v35  ;;  %v478_v50 = vmul.f32 %v1196_v8, %v221_v36  ;;  %v241_v38 = vld [vmem:[#allocation6 + $0x650] sm:$0xff]  ;;  %v242_v39 = vld [vmem:[#allocation6 + $0x658] sm:$0xff] }
  0x95   :  { %983 = vst [vmem:[#allocation7 + $0x570] sm:$0xff] %v727_v40  ;;  %984 = vst [vmem:[#allocation7 + $0x578] sm:$0xff] %v728_v41  ;;  %v479_v51 = vmul.f32 %v1196_v8, %v222_v37  ;;  %v729_v55 = vadd.f32 %v1198_v9, %v472_v42  ;;  %v730_v56 = vadd.f32 %v1198_v9, %v473_v43  ;;  %v243_v40 = vld [vmem:[#allocation6 + $0x660] sm:$0xff] }
  0x96   :  { %v731_v57 = vadd.f32 %v1198_v9, %v474_v44  ;;  %v732_v58 = vadd.f32 %v1198_v9, %v475_v45  ;;  %v733_v62 = vadd.f32 %v1198_v9, %v476_v48  ;;  %v734_v63 = vadd.f32 %v1198_v9, %v477_v49  ;;  %v244_v45 = vld [vmem:[#allocation6 + $0x668] sm:$0xff] }
  0x97   :  { %v735_v0 = vadd.f32 %v1198_v9, %v478_v50  ;;  %v736_v1 = vadd.f32 %v1198_v9, %v479_v51  ;;  %985 = vst [vmem:[#allocation7 + $0x580] sm:$0xff] %v729_v55  ;;  %986 = vst [vmem:[#allocation7 + $0x588] sm:$0xff] %v730_v56  ;;  %v480_v2 = vmul.f32 %v1196_v8, %v223_v46  ;;  %v245_v46 = vld [vmem:[#allocation6 + $0x670] sm:$0xff]  ;;  %v247_v56 = vld [vmem:[#allocation6 + $0x680] sm:$0xff] }
  0x98   :  { %987 = vst [vmem:[#allocation7 + $0x590] sm:$0xff] %v731_v57  ;;  %988 = vst [vmem:[#allocation7 + $0x598] sm:$0xff] %v732_v58  ;;  %v481_v3 = vmul.f32 %v1196_v8, %v224_v47  ;;  %v482_v4 = vmul.f32 %v1196_v8, %v225_v52  ;;  %v483_v5 = vmul.f32 %v1196_v8, %v226_v53  ;;  %v246_v47 = vld [vmem:[#allocation6 + $0x678] sm:$0xff]  ;;  %v248_v57 = vld [vmem:[#allocation6 + $0x688] sm:$0xff] }
  0x99   :  { %989 = vst [vmem:[#allocation7 + $0x5a0] sm:$0xff] %v733_v62  ;;  %990 = vst [vmem:[#allocation7 + $0x5a8] sm:$0xff] %v734_v63  ;;  %v484_v10 = vmul.f32 %v1196_v8, %v227_v54  ;;  %v485_v11 = vmul.f32 %v1196_v8, %v228_v59  ;;  %v486_v12 = vmul.f32 %v1196_v8, %v229_v60  ;;  %v249_v62 = vld [vmem:[#allocation6 + $0x690] sm:$0xff]  ;;  %v250_v63 = vld [vmem:[#allocation6 + $0x698] sm:$0xff] }
  0x9a   :  { %991 = vst [vmem:[#allocation7 + $0x5b0] sm:$0xff] %v735_v0  ;;  %992 = vst [vmem:[#allocation7 + $0x5b8] sm:$0xff] %v736_v1  ;;  %v487_v13 = vmul.f32 %v1196_v8, %v230_v61  ;;  %v737_v17 = vadd.f32 %v1198_v9, %v480_v2  ;;  %v738_v18 = vadd.f32 %v1198_v9, %v481_v3  ;;  %v251_v0 = vld [vmem:[#allocation6 + $0x6a0] sm:$0xff] }
  0x9b   :  { %v739_v19 = vadd.f32 %v1198_v9, %v482_v4  ;;  %v740_v20 = vadd.f32 %v1198_v9, %v483_v5  ;;  %v741_v24 = vadd.f32 %v1198_v9, %v484_v10  ;;  %v742_v25 = vadd.f32 %v1198_v9, %v485_v11  ;;  %v252_v5 = vld [vmem:[#allocation6 + $0x6a8] sm:$0xff] }
  0x9c   :  { %v743_v26 = vadd.f32 %v1198_v9, %v486_v12  ;;  %v744_v27 = vadd.f32 %v1198_v9, %v487_v13  ;;  %993 = vst [vmem:[#allocation7 + $0x5c0] sm:$0xff] %v737_v17  ;;  %994 = vst [vmem:[#allocation7 + $0x5c8] sm:$0xff] %v738_v18  ;;  %v488_v28 = vmul.f32 %v1196_v8, %v231_v6  ;;  %v253_v6 = vld [vmem:[#allocation6 + $0x6b0] sm:$0xff]  ;;  %v255_v18 = vld [vmem:[#allocation6 + $0x6c0] sm:$0xff] }
  0x9d   :  { %995 = vst [vmem:[#allocation7 + $0x5d0] sm:$0xff] %v739_v19  ;;  %996 = vst [vmem:[#allocation7 + $0x5d8] sm:$0xff] %v740_v20  ;;  %v489_v29 = vmul.f32 %v1196_v8, %v232_v7  ;;  %v490_v30 = vmul.f32 %v1196_v8, %v233_v14  ;;  %v491_v31 = vmul.f32 %v1196_v8, %v234_v15  ;;  %v254_v7 = vld [vmem:[#allocation6 + $0x6b8] sm:$0xff]  ;;  %v256_v19 = vld [vmem:[#allocation6 + $0x6c8] sm:$0xff] }
  0x9e   :  { %997 = vst [vmem:[#allocation7 + $0x5e0] sm:$0xff] %v741_v24  ;;  %998 = vst [vmem:[#allocation7 + $0x5e8] sm:$0xff] %v742_v25  ;;  %v492_v34 = vmul.f32 %v1196_v8, %v235_v16  ;;  %v493_v35 = vmul.f32 %v1196_v8, %v236_v21  ;;  %v494_v36 = vmul.f32 %v1196_v8, %v237_v22  ;;  %v257_v24 = vld [vmem:[#allocation6 + $0x6d0] sm:$0xff]  ;;  %v258_v25 = vld [vmem:[#allocation6 + $0x6d8] sm:$0xff] }
  0x9f   :  { %999 = vst [vmem:[#allocation7 + $0x5f0] sm:$0xff] %v743_v26  ;;  %1000 = vst [vmem:[#allocation7 + $0x5f8] sm:$0xff] %v744_v27  ;;  %v495_v37 = vmul.f32 %v1196_v8, %v238_v23  ;;  %v745_v41 = vadd.f32 %v1198_v9, %v488_v28  ;;  %v746_v42 = vadd.f32 %v1198_v9, %v489_v29  ;;  %v259_v26 = vld [vmem:[#allocation6 + $0x6e0] sm:$0xff] }
  0xa0   :  { %v747_v43 = vadd.f32 %v1198_v9, %v490_v30  ;;  %v748_v44 = vadd.f32 %v1198_v9, %v491_v31  ;;  %v749_v48 = vadd.f32 %v1198_v9, %v492_v34  ;;  %v750_v49 = vadd.f32 %v1198_v9, %v493_v35  ;;  %v260_v31 = vld [vmem:[#allocation6 + $0x6e8] sm:$0xff] }
  0xa1   :  { %v751_v50 = vadd.f32 %v1198_v9, %v494_v36  ;;  %v752_v51 = vadd.f32 %v1198_v9, %v495_v37  ;;  %1001 = vst [vmem:[#allocation7 + $0x600] sm:$0xff] %v745_v41  ;;  %1002 = vst [vmem:[#allocation7 + $0x608] sm:$0xff] %v746_v42  ;;  %v496_v52 = vmul.f32 %v1196_v8, %v239_v32  ;;  %v261_v32 = vld [vmem:[#allocation6 + $0x6f0] sm:$0xff]  ;;  %v263_v42 = vld [vmem:[#allocation6 + $0x700] sm:$0xff] }
  0xa2   :  { %1003 = vst [vmem:[#allocation7 + $0x610] sm:$0xff] %v747_v43  ;;  %1004 = vst [vmem:[#allocation7 + $0x618] sm:$0xff] %v748_v44  ;;  %v497_v53 = vmul.f32 %v1196_v8, %v240_v33  ;;  %v498_v54 = vmul.f32 %v1196_v8, %v241_v38  ;;  %v499_v55 = vmul.f32 %v1196_v8, %v242_v39  ;;  %v262_v33 = vld [vmem:[#allocation6 + $0x6f8] sm:$0xff]  ;;  %v264_v43 = vld [vmem:[#allocation6 + $0x708] sm:$0xff] }
  0xa3   :  { %1005 = vst [vmem:[#allocation7 + $0x620] sm:$0xff] %v749_v48  ;;  %1006 = vst [vmem:[#allocation7 + $0x628] sm:$0xff] %v750_v49  ;;  %v500_v58 = vmul.f32 %v1196_v8, %v243_v40  ;;  %v501_v59 = vmul.f32 %v1196_v8, %v244_v45  ;;  %v502_v60 = vmul.f32 %v1196_v8, %v245_v46  ;;  %v265_v48 = vld [vmem:[#allocation6 + $0x710] sm:$0xff]  ;;  %v266_v49 = vld [vmem:[#allocation6 + $0x718] sm:$0xff] }
  0xa4   :  { %1007 = vst [vmem:[#allocation7 + $0x630] sm:$0xff] %v751_v50  ;;  %1008 = vst [vmem:[#allocation7 + $0x638] sm:$0xff] %v752_v51  ;;  %v503_v61 = vmul.f32 %v1196_v8, %v246_v47  ;;  %v753_v1 = vadd.f32 %v1198_v9, %v496_v52  ;;  %v754_v2 = vadd.f32 %v1198_v9, %v497_v53  ;;  %v267_v50 = vld [vmem:[#allocation6 + $0x720] sm:$0xff] }
  0xa5   :  { %v755_v3 = vadd.f32 %v1198_v9, %v498_v54  ;;  %v756_v4 = vadd.f32 %v1198_v9, %v499_v55  ;;  %v757_v10 = vadd.f32 %v1198_v9, %v500_v58  ;;  %v758_v11 = vadd.f32 %v1198_v9, %v501_v59  ;;  %v268_v55 = vld [vmem:[#allocation6 + $0x728] sm:$0xff] }
  0xa6   :  { %v759_v12 = vadd.f32 %v1198_v9, %v502_v60  ;;  %v760_v13 = vadd.f32 %v1198_v9, %v503_v61  ;;  %1009 = vst [vmem:[#allocation7 + $0x640] sm:$0xff] %v753_v1  ;;  %1010 = vst [vmem:[#allocation7 + $0x648] sm:$0xff] %v754_v2  ;;  %v504_v14 = vmul.f32 %v1196_v8, %v247_v56  ;;  %v269_v56 = vld [vmem:[#allocation6 + $0x730] sm:$0xff]  ;;  %v271_v2 = vld [vmem:[#allocation6 + $0x740] sm:$0xff] }
  0xa7   :  { %1011 = vst [vmem:[#allocation7 + $0x650] sm:$0xff] %v755_v3  ;;  %1012 = vst [vmem:[#allocation7 + $0x658] sm:$0xff] %v756_v4  ;;  %v505_v15 = vmul.f32 %v1196_v8, %v248_v57  ;;  %v506_v16 = vmul.f32 %v1196_v8, %v249_v62  ;;  %v507_v17 = vmul.f32 %v1196_v8, %v250_v63  ;;  %v270_v57 = vld [vmem:[#allocation6 + $0x738] sm:$0xff]  ;;  %v272_v3 = vld [vmem:[#allocation6 + $0x748] sm:$0xff] }
  0xa8   :  { %1013 = vst [vmem:[#allocation7 + $0x660] sm:$0xff] %v757_v10  ;;  %1014 = vst [vmem:[#allocation7 + $0x668] sm:$0xff] %v758_v11  ;;  %v508_v20 = vmul.f32 %v1196_v8, %v251_v0  ;;  %v509_v21 = vmul.f32 %v1196_v8, %v252_v5  ;;  %v510_v22 = vmul.f32 %v1196_v8, %v253_v6  ;;  %v273_v10 = vld [vmem:[#allocation6 + $0x750] sm:$0xff]  ;;  %v274_v11 = vld [vmem:[#allocation6 + $0x758] sm:$0xff] }
  0xa9   :  { %1015 = vst [vmem:[#allocation7 + $0x670] sm:$0xff] %v759_v12  ;;  %1016 = vst [vmem:[#allocation7 + $0x678] sm:$0xff] %v760_v13  ;;  %v511_v23 = vmul.f32 %v1196_v8, %v254_v7  ;;  %v761_v27 = vadd.f32 %v1198_v9, %v504_v14  ;;  %v762_v28 = vadd.f32 %v1198_v9, %v505_v15  ;;  %v275_v12 = vld [vmem:[#allocation6 + $0x760] sm:$0xff] }
  0xaa   :  { %v763_v29 = vadd.f32 %v1198_v9, %v506_v16  ;;  %v764_v30 = vadd.f32 %v1198_v9, %v507_v17  ;;  %v765_v34 = vadd.f32 %v1198_v9, %v508_v20  ;;  %v766_v35 = vadd.f32 %v1198_v9, %v509_v21  ;;  %v276_v17 = vld [vmem:[#allocation6 + $0x768] sm:$0xff] }
  0xab   :  { %v767_v36 = vadd.f32 %v1198_v9, %v510_v22  ;;  %v768_v37 = vadd.f32 %v1198_v9, %v511_v23  ;;  %1017 = vst [vmem:[#allocation7 + $0x680] sm:$0xff] %v761_v27  ;;  %1018 = vst [vmem:[#allocation7 + $0x688] sm:$0xff] %v762_v28  ;;  %v512_v38 = vmul.f32 %v1196_v8, %v255_v18  ;;  %v277_v18 = vld [vmem:[#allocation6 + $0x770] sm:$0xff]  ;;  %v279_v28 = vld [vmem:[#allocation6 + $0x780] sm:$0xff] }
  0xac   :  { %1019 = vst [vmem:[#allocation7 + $0x690] sm:$0xff] %v763_v29  ;;  %1020 = vst [vmem:[#allocation7 + $0x698] sm:$0xff] %v764_v30  ;;  %v513_v39 = vmul.f32 %v1196_v8, %v256_v19  ;;  %v514_v40 = vmul.f32 %v1196_v8, %v257_v24  ;;  %v515_v41 = vmul.f32 %v1196_v8, %v258_v25  ;;  %v278_v19 = vld [vmem:[#allocation6 + $0x778] sm:$0xff]  ;;  %v280_v29 = vld [vmem:[#allocation6 + $0x788] sm:$0xff] }
  0xad   :  { %1021 = vst [vmem:[#allocation7 + $0x6a0] sm:$0xff] %v765_v34  ;;  %1022 = vst [vmem:[#allocation7 + $0x6a8] sm:$0xff] %v766_v35  ;;  %v516_v44 = vmul.f32 %v1196_v8, %v259_v26  ;;  %v517_v45 = vmul.f32 %v1196_v8, %v260_v31  ;;  %v518_v46 = vmul.f32 %v1196_v8, %v261_v32  ;;  %v281_v34 = vld [vmem:[#allocation6 + $0x790] sm:$0xff]  ;;  %v282_v35 = vld [vmem:[#allocation6 + $0x798] sm:$0xff] }
  0xae   :  { %1023 = vst [vmem:[#allocation7 + $0x6b0] sm:$0xff] %v767_v36  ;;  %1024 = vst [vmem:[#allocation7 + $0x6b8] sm:$0xff] %v768_v37  ;;  %v519_v47 = vmul.f32 %v1196_v8, %v262_v33  ;;  %v769_v51 = vadd.f32 %v1198_v9, %v512_v38  ;;  %v770_v52 = vadd.f32 %v1198_v9, %v513_v39  ;;  %v283_v36 = vld [vmem:[#allocation6 + $0x7a0] sm:$0xff] }
  0xaf   :  { %v771_v53 = vadd.f32 %v1198_v9, %v514_v40  ;;  %v772_v54 = vadd.f32 %v1198_v9, %v515_v41  ;;  %v773_v58 = vadd.f32 %v1198_v9, %v516_v44  ;;  %v774_v59 = vadd.f32 %v1198_v9, %v517_v45  ;;  %v284_v41 = vld [vmem:[#allocation6 + $0x7a8] sm:$0xff] }
  0xb0   :  { %v775_v60 = vadd.f32 %v1198_v9, %v518_v46  ;;  %v776_v61 = vadd.f32 %v1198_v9, %v519_v47  ;;  %1025 = vst [vmem:[#allocation7 + $0x6c0] sm:$0xff] %v769_v51  ;;  %1026 = vst [vmem:[#allocation7 + $0x6c8] sm:$0xff] %v770_v52  ;;  %v520_v62 = vmul.f32 %v1196_v8, %v263_v42  ;;  %v285_v42 = vld [vmem:[#allocation6 + $0x7b0] sm:$0xff]  ;;  %v287_v52 = vld [vmem:[#allocation6 + $0x7c0] sm:$0xff] }
  0xb1   :  { %1027 = vst [vmem:[#allocation7 + $0x6d0] sm:$0xff] %v771_v53  ;;  %1028 = vst [vmem:[#allocation7 + $0x6d8] sm:$0xff] %v772_v54  ;;  %v521_v63 = vmul.f32 %v1196_v8, %v264_v43  ;;  %v522_v0 = vmul.f32 %v1196_v8, %v265_v48  ;;  %v523_v1 = vmul.f32 %v1196_v8, %v266_v49  ;;  %v286_v43 = vld [vmem:[#allocation6 + $0x7b8] sm:$0xff]  ;;  %v288_v53 = vld [vmem:[#allocation6 + $0x7c8] sm:$0xff] }
  0xb2   :  { %1029 = vst [vmem:[#allocation7 + $0x6e0] sm:$0xff] %v773_v58  ;;  %1030 = vst [vmem:[#allocation7 + $0x6e8] sm:$0xff] %v774_v59  ;;  %v524_v4 = vmul.f32 %v1196_v8, %v267_v50  ;;  %v525_v5 = vmul.f32 %v1196_v8, %v268_v55  ;;  %v526_v6 = vmul.f32 %v1196_v8, %v269_v56  ;;  %v289_v58 = vld [vmem:[#allocation6 + $0x7d0] sm:$0xff]  ;;  %v290_v59 = vld [vmem:[#allocation6 + $0x7d8] sm:$0xff] }
  0xb3   :  { %1031 = vst [vmem:[#allocation7 + $0x6f0] sm:$0xff] %v775_v60  ;;  %1032 = vst [vmem:[#allocation7 + $0x6f8] sm:$0xff] %v776_v61  ;;  %v527_v7 = vmul.f32 %v1196_v8, %v270_v57  ;;  %v777_v13 = vadd.f32 %v1198_v9, %v520_v62  ;;  %v778_v14 = vadd.f32 %v1198_v9, %v521_v63  ;;  %v291_v60 = vld [vmem:[#allocation6 + $0x7e0] sm:$0xff] }
  0xb4   :  { %v779_v15 = vadd.f32 %v1198_v9, %v522_v0  ;;  %v780_v16 = vadd.f32 %v1198_v9, %v523_v1  ;;  %v781_v20 = vadd.f32 %v1198_v9, %v524_v4  ;;  %v782_v21 = vadd.f32 %v1198_v9, %v525_v5  ;;  %v292_v1 = vld [vmem:[#allocation6 + $0x7e8] sm:$0xff] }
  0xb5   :  { %v783_v22 = vadd.f32 %v1198_v9, %v526_v6  ;;  %v784_v23 = vadd.f32 %v1198_v9, %v527_v7  ;;  %1033 = vst [vmem:[#allocation7 + $0x700] sm:$0xff] %v777_v13  ;;  %1034 = vst [vmem:[#allocation7 + $0x708] sm:$0xff] %v778_v14  ;;  %v528_v24 = vmul.f32 %v1196_v8, %v271_v2  ;;  %v293_v2 = vld [vmem:[#allocation6 + $0x7f0] sm:$0xff] }
  0xb6   :  { %1035 = vst [vmem:[#allocation7 + $0x710] sm:$0xff] %v779_v15  ;;  %1036 = vst [vmem:[#allocation7 + $0x718] sm:$0xff] %v780_v16  ;;  %v529_v25 = vmul.f32 %v1196_v8, %v272_v3  ;;  %v530_v26 = vmul.f32 %v1196_v8, %v273_v10  ;;  %v531_v27 = vmul.f32 %v1196_v8, %v274_v11  ;;  %v294_v3 = vld [vmem:[#allocation6 + $0x7f8] sm:$0xff] }
  0xb7   :  { %1037 = vst [vmem:[#allocation7 + $0x720] sm:$0xff] %v781_v20  ;;  %1038 = vst [vmem:[#allocation7 + $0x728] sm:$0xff] %v782_v21  ;;  %v532_v30 = vmul.f32 %v1196_v8, %v275_v12  ;;  %v533_v31 = vmul.f32 %v1196_v8, %v276_v17  ;;  %v534_v32 = vmul.f32 %v1196_v8, %v277_v18 }
  0xb8   :  { %1039 = vst [vmem:[#allocation7 + $0x730] sm:$0xff] %v783_v22  ;;  %1040 = vst [vmem:[#allocation7 + $0x738] sm:$0xff] %v784_v23  ;;  %v535_v33 = vmul.f32 %v1196_v8, %v278_v19  ;;  %v785_v37 = vadd.f32 %v1198_v9, %v528_v24  ;;  %v786_v38 = vadd.f32 %v1198_v9, %v529_v25 }
  0xb9   :  { %v787_v39 = vadd.f32 %v1198_v9, %v530_v26  ;;  %v788_v40 = vadd.f32 %v1198_v9, %v531_v27  ;;  %v789_v44 = vadd.f32 %v1198_v9, %v532_v30  ;;  %v790_v45 = vadd.f32 %v1198_v9, %v533_v31 }
  0xba   :  { %v791_v46 = vadd.f32 %v1198_v9, %v534_v32  ;;  %v792_v47 = vadd.f32 %v1198_v9, %v535_v33  ;;  %1041 = vst [vmem:[#allocation7 + $0x740] sm:$0xff] %v785_v37  ;;  %1042 = vst [vmem:[#allocation7 + $0x748] sm:$0xff] %v786_v38  ;;  %v536_v48 = vmul.f32 %v1196_v8, %v279_v28 }
  0xbb   :  { %1043 = vst [vmem:[#allocation7 + $0x750] sm:$0xff] %v787_v39  ;;  %1044 = vst [vmem:[#allocation7 + $0x758] sm:$0xff] %v788_v40  ;;  %v537_v49 = vmul.f32 %v1196_v8, %v280_v29  ;;  %v538_v50 = vmul.f32 %v1196_v8, %v281_v34  ;;  %v539_v51 = vmul.f32 %v1196_v8, %v282_v35 }
  0xbc   :  { %1045 = vst [vmem:[#allocation7 + $0x760] sm:$0xff] %v789_v44  ;;  %1046 = vst [vmem:[#allocation7 + $0x768] sm:$0xff] %v790_v45  ;;  %v540_v54 = vmul.f32 %v1196_v8, %v283_v36  ;;  %v541_v55 = vmul.f32 %v1196_v8, %v284_v41  ;;  %v542_v56 = vmul.f32 %v1196_v8, %v285_v42 }
  0xbd   :  { %1047 = vst [vmem:[#allocation7 + $0x770] sm:$0xff] %v791_v46  ;;  %1048 = vst [vmem:[#allocation7 + $0x778] sm:$0xff] %v792_v47  ;;  %v543_v57 = vmul.f32 %v1196_v8, %v286_v43  ;;  %v793_v61 = vadd.f32 %v1198_v9, %v536_v48  ;;  %v794_v62 = vadd.f32 %v1198_v9, %v537_v49 }
  0xbe   :  { %v795_v63 = vadd.f32 %v1198_v9, %v538_v50  ;;  %v796_v0 = vadd.f32 %v1198_v9, %v539_v51  ;;  %v797_v4 = vadd.f32 %v1198_v9, %v540_v54  ;;  %v798_v5 = vadd.f32 %v1198_v9, %v541_v55 }
  0xbf   :  { %v799_v6 = vadd.f32 %v1198_v9, %v542_v56  ;;  %v800_v7 = vadd.f32 %v1198_v9, %v543_v57  ;;  %1049 = vst [vmem:[#allocation7 + $0x780] sm:$0xff] %v793_v61  ;;  %1050 = vst [vmem:[#allocation7 + $0x788] sm:$0xff] %v794_v62  ;;  %v544_v10 = vmul.f32 %v1196_v8, %v287_v52 }
  0xc0   :  { %1051 = vst [vmem:[#allocation7 + $0x790] sm:$0xff] %v795_v63  ;;  %1052 = vst [vmem:[#allocation7 + $0x798] sm:$0xff] %v796_v0  ;;  %v545_v11 = vmul.f32 %v1196_v8, %v288_v53  ;;  %v546_v12 = vmul.f32 %v1196_v8, %v289_v58  ;;  %v547_v13 = vmul.f32 %v1196_v8, %v290_v59 }
  0xc1   :  { %1053 = vst [vmem:[#allocation7 + $0x7a0] sm:$0xff] %v797_v4  ;;  %1054 = vst [vmem:[#allocation7 + $0x7a8] sm:$0xff] %v798_v5  ;;  %v548_v14 = vmul.f32 %v1196_v8, %v291_v60  ;;  %v549_v15 = vmul.f32 %v1196_v8, %v292_v1  ;;  %v550_v16 = vmul.f32 %v1196_v8, %v293_v2 }
  0xc2   :  { %1055 = vst [vmem:[#allocation7 + $0x7b0] sm:$0xff] %v799_v6  ;;  %1056 = vst [vmem:[#allocation7 + $0x7b8] sm:$0xff] %v800_v7  ;;  %v551_v17 = vmul.f32 %v1196_v8, %v294_v3  ;;  %v801_v18 = vadd.f32 %v1198_v9, %v544_v10  ;;  %v802_v19 = vadd.f32 %v1198_v9, %v545_v11 }
  0xc3   :  { %v803_v20 = vadd.f32 %v1198_v9, %v546_v12  ;;  %v804_v21 = vadd.f32 %v1198_v9, %v547_v13  ;;  %v805_v22 = vadd.f32 %v1198_v9, %v548_v14  ;;  %v806_v23 = vadd.f32 %v1198_v9, %v549_v15 }
  0xc4   :  { %v807_v24 = vadd.f32 %v1198_v9, %v550_v16  ;;  %v808_v25 = vadd.f32 %v1198_v9, %v551_v17  ;;  %1057 = vst [vmem:[#allocation7 + $0x7c0] sm:$0xff] %v801_v18  ;;  %1058 = vst [vmem:[#allocation7 + $0x7c8] sm:$0xff] %v802_v19 }
  0xc5   :  { %1059 = vst [vmem:[#allocation7 + $0x7d0] sm:$0xff] %v803_v20  ;;  %1060 = vst [vmem:[#allocation7 + $0x7d8] sm:$0xff] %v804_v21 }
  0xc6   :  { %1061 = vst [vmem:[#allocation7 + $0x7e0] sm:$0xff] %v805_v22  ;;  %1062 = vst [vmem:[#allocation7 + $0x7e8] sm:$0xff] %v806_v23 }
  0xc7   :  { %1063 = vst [vmem:[#allocation7 + $0x7f0] sm:$0xff] %v807_v24  ;;  %1064 = vst [vmem:[#allocation7 + $0x7f8] sm:$0xff] %v808_v25 }
  0xc8   :  { %1132 = shalt.err (!%p1129_p1)
}
  0xc9   :  { %s1133_s10 = scalar_lea.hbm %s1729_s2, 32768 }
  0xca   :  { %p1134_p2 = scmp.ne.s32.totalorder %s1729_s2, %s1133_s10  ;;  %p1137_p3 = scmp.lt.u32.totalorder %s1133_s10, %s1729_s2 }
  0xcc   :  { %p1139_p4 = pnand %p1137_p3, %p1134_p2 }
  0xce   :  { %1142 = shalt.err (!%p1139_p4)
}
  0xcf   :  { %1076 = dma.vmem_to_hbm [thread:$0]  %s1071_s6, 32768, %s1729_s2, [#allocation4], %s1151_s0, %s1151_s0, %s1152_s29  }
  0xd0   :  { %1147 = dma.done.wait [#allocation4], 32768  }
  0xd1   :  { %1148 = vsyncadd [#allocation4], 4294934528 }
  0xd2   :  { %1080 = vsyncpa [#allocation3], 1 }
  0xd3   :  { %1081 = vsyncpa [#allocation4], 1 }
  0xd4   :  { %1082 = vsyncpa [#allocation5], 1 }

</bundles_post_ra>
